<compile_context>
chip_gen: v7x
topology: tpu7x:2x2x1
jax: 0.10.0
libtpu: 0.0.40
codegen_flags: <defaults>
</compile_context>

<pallas_src>
import functools

import jax
import jax.numpy as jnp
from jax.experimental import pallas as pl
from jax.experimental.pallas import tpu as pltpu  # noqa: F401  (TPU backend)

LANE = 128


# ---------------------------------------------------------------- kernel -----

def fused_gcn_mlp_kernel(x_ref, m_ref, c_ref,
                         w1_ref, b1_ref, w2_ref, b2_ref, w3_ref, b3_ref,
                         o_ref):
    """Fused (folded GCN) + MLP, whole (padded) batch in one MXU pass.

    x_ref : (Bp, S*T)   f32   flattened input
    m_ref : (S*T, S*T)  bf16  folded linear GCN operator  kron(A2.T, Wg1@Wg2)
    c_ref : (1, S*T)    f32   folded GCN bias term
    w*    : bf16 [in, out];  b* : f32 [1, out]   (w3/b3 zero-padded to 128 cols)
    o_ref : (Bp, 128)   f32   lane-dense padded output
    """
    # Folded 2-layer graph convolution (purely linear -> one matmul + bias).
    x = x_ref[...].astype(jnp.bfloat16)
    h = jnp.dot(x, m_ref[...], preferred_element_type=jnp.float32) + c_ref[...]
    # MLP head: bf16 operands into the MXU, f32 accumulation, f32 bias/relu.
    h = jnp.maximum(
        jnp.dot(h.astype(jnp.bfloat16), w1_ref[...],
                preferred_element_type=jnp.float32) + b1_ref[...], 0.0)
    h = jnp.maximum(
        jnp.dot(h.astype(jnp.bfloat16), w2_ref[...],
                preferred_element_type=jnp.float32) + b2_ref[...], 0.0)
    h = jnp.dot(h.astype(jnp.bfloat16), w3_ref[...],
                preferred_element_type=jnp.float32) + b3_ref[...]
    o_ref[...] = h.astype(o_ref.dtype)


# ----------------------------------------------- one-time parameter prep -----

def prepare_operands(params, adj):
    """Constant-fold the linear GCN layers + dtype/layout prep.

    Runs ONCE (adj and weights are static); the per-call forward only does
    pad -> pallas_call -> slice.
        h2 = A2 @ x @ Wg + C,   A2 = adj@adj,  Wg = Wg1@Wg2,
        C  = rowsum(adj) @ (bg1 @ Wg2) + bg2
        h2_flat = x_flat @ kron(A2.T, Wg) + C_flat
    """
    A2 = adj @ adj                                                # (S, S)
    Wg = params["wg1"] @ params["wg2"]                            # (T, T)
    rowsum = jnp.sum(adj, axis=1, keepdims=True)                  # (S, 1)
    C = rowsum @ (params["bg1"] @ params["wg2"]) + params["bg2"]  # (S, T)
    M = jnp.kron(A2.T, Wg)                                        # (S*T, S*T)
    S, T = adj.shape[0], params["wg1"].shape[0]
    c_flat = C.reshape(1, S * T).astype(jnp.float32)

    # Lane-dense output: zero-pad the last layer to a multiple of 128 columns.
    n_out = params["w3"].shape[1]
    n_pad = max(LANE, ((n_out + LANE - 1) // LANE) * LANE)
    w3p = jnp.zeros((params["w3"].shape[0], n_pad),
                    jnp.float32).at[:, :n_out].set(params["w3"])
    b3p = jnp.zeros((1, n_pad), jnp.float32).at[:, :n_out].set(params["b3"])

    return {
        "m": M.astype(jnp.bfloat16),
        "c": c_flat,
        "w1": params["w1"].astype(jnp.bfloat16),
        "b1": params["b1"].astype(jnp.float32),
        "w2": params["w2"].astype(jnp.bfloat16),
        "b2": params["b2"].astype(jnp.float32),
        "w3": w3p.astype(jnp.bfloat16),
        "b3": b3p,
    }
    # TODO(synk): on v7x only, W2 could additionally be stored as fp8 with a
    # per-tensor scale (native bf16+fp8 MXU); kept bf16 here for portability.


# --------------------------------------------------------------- wrapper -----

@functools.partial(jax.jit, static_argnames=("pre_len",))
def model_forward(speed, ops, pre_len):
    B, S, T = speed.shape
    ST = S * T
    n_pad = ops["w3"].shape[1]
    n_out = S * pre_len

    flat = speed.reshape(B, ST)
    Bp = max(8, ((B + 7) // 8) * 8)          # pad batch to 8 sublanes
    flat_p = jnp.pad(flat, ((0, Bp - B), (0, 0)))

    operands = (flat_p, ops["m"], ops["c"],
                ops["w1"], ops["b1"], ops["w2"], ops["b2"],
                ops["w3"], ops["b3"])

    flops = 2 * Bp * (ST * ST
                      + ST * ops["w1"].shape[1]
                      + ops["w1"].shape[1] * ops["w2"].shape[1]
                      + ops["w2"].shape[1] * n_pad)
    bytes_accessed = (sum(int(a.size) * a.dtype.itemsize for a in operands)
                      + Bp * n_pad * 4)

    out_p = pl.pallas_call(
        fused_gcn_mlp_kernel,
        out_shape=jax.ShapeDtypeStruct((Bp, n_pad), jnp.float32),
        cost_estimate=pl.CostEstimate(flops=flops, transcendentals=0,
                                      bytes_accessed=bytes_accessed),
    )(*operands)

    return out_p[:B, :n_out].reshape(B, S, pre_len)


# -------------------------------------------------------- reference (JAX) ----

def model_forward_ref(speed, adj, params):
    """Direct (unfolded) f32 translation of the PyTorch forward."""
    B, S, T = speed.shape
    P = params["w3"].shape[1] // S
    with jax.default_matmul_precision("highest"):
        s1 = speed @ params["wg1"]
        h1 = jnp.einsum("sk,bkt->bst", adj, s1) + params["bg1"]
        s2 = h1 @ params["wg2"]
        h2 = jnp.einsum("sk,bkt->bst", adj, s2) + params["bg2"]
        f = h2.reshape(B, S * T)
        f = jnp.maximum(f @ params["w1"] + params["b1"], 0.0)
        f = jnp.maximum(f @ params["w2"] + params["b2"], 0.0)
        f = f @ params["w3"] + params["b3"]
    return f.reshape(B, S, P)


# ------------------------------------------------------------------ setup ----

def init_params(key, time_lag, station_num, pre_len):
    """Deterministic synthetic init mimicking the PyTorch uniform ranges."""
    ks = jax.random.split(key, 10)

    def u(k, shape, bound):
        return jax.random.uniform(k, shape, jnp.float32, -bound, bound)

    stdv_g = 1.0 / (time_lag ** 0.5)
    in1 = time_lag * station_num
    return {
        # GraphConvolution weights: [in_features, out_features]
        "wg1": u(ks[0], (time_lag, time_lag), stdv_g),
        "bg1": u(ks[1], (1, time_lag), stdv_g),
        "wg2": u(ks[2], (time_lag, time_lag), stdv_g),
        "bg2": u(ks[3], (1, time_lag), stdv_g),
        # Linear layers stored as [in, out] (synthetic init -> no transpose).
        "w1": u(ks[4], (in1, 1024), 1.0 / (in1 ** 0.5)),
        "b1": u(ks[5], (1, 1024), 1.0 / (in1 ** 0.5)),
        "w2": u(ks[6], (1024, 512), 1.0 / (1024 ** 0.5)),
        "b2": u(ks[7], (1, 512), 1.0 / (1024 ** 0.5)),
        "w3": u(ks[8], (512, station_num * pre_len), 1.0 / (512 ** 0.5)),
        "b3": u(ks[9], (1, station_num * pre_len), 1.0 / (512 ** 0.5)),
    }


# ------------------------------------------------------------------- main ----

if __name__ == "__main__":
    B, station_num, time_lag, pre_len = 2, 16, 8, 4

    key = jax.random.PRNGKey(0)
    k_par, k_speed, k_adj = jax.random.split(key, 3)

    params = init_params(k_par, time_lag, station_num, pre_len)
    speed = jax.random.normal(k_speed, (B, station_num, time_lag), jnp.float32)
    adj = jax.random.uniform(k_adj, (station_num, station_num), jnp.float32)

    # One-time constant folding + bf16/layout prep (off the per-call path).
    ops = jax.tree_util.tree_map(jax.block_until_ready,
                                 prepare_operands(params, adj))

    out = jax.block_until_ready(model_forward(speed, ops, pre_len=pre_len))

    ref = model_forward_ref(speed, adj, params)
    assert out.shape == (B, station_num, pre_len), out.shape
    max_err = float(jnp.max(jnp.abs(out - ref)))
    # bf16 weight storage (f32 accumulation) vs an f32-"highest" reference.
    assert jnp.allclose(out, ref, atol=3e-2, rtol=3e-2), (
        f"mismatch vs JAX reference; max abs err = {max_err}")

    print("KERNEL_OK")
</pallas_src>

<mosaic_0001>
module attributes {stable_mosaic.version = 11 : i64} {
  func.func @fused_gcn_mlp_kernel(%arg0: memref<8x128xf32, #tpu.memory_space<vmem>>, %arg1: memref<128x128xbf16, #tpu.memory_space<vmem>>, %arg2: memref<1x128xf32, #tpu.memory_space<vmem>>, %arg3: memref<128x1024xbf16, #tpu.memory_space<vmem>>, %arg4: memref<1x1024xf32, #tpu.memory_space<vmem>>, %arg5: memref<1024x512xbf16, #tpu.memory_space<vmem>>, %arg6: memref<1x512xf32, #tpu.memory_space<vmem>>, %arg7: memref<512x128xbf16, #tpu.memory_space<vmem>>, %arg8: memref<1x128xf32, #tpu.memory_space<vmem>>, %arg9: memref<8x128xf32, #tpu.memory_space<vmem>>) attributes {dimension_semantics = [], scalar_prefetch = 0 : i64, scratch_operands = 0 : i64, tpu.core_type = #tpu.core_type<tc>} {
    %c0 = arith.constant 0 : index
    %c0_0 = arith.constant 0 : index
    %0 = vector.load %arg0[%c0, %c0_0] : memref<8x128xf32, #tpu.memory_space<vmem>>, vector<8x128xf32>
    %1 = arith.truncf %0 : vector<8x128xf32> to vector<8x128xbf16>
    %c0_1 = arith.constant 0 : index
    %c0_2 = arith.constant 0 : index
    %2 = vector.load %arg1[%c0_1, %c0_2] : memref<128x128xbf16, #tpu.memory_space<vmem>>, vector<128x128xbf16>
    %cst = arith.constant dense<0.000000e+00> : vector<8x128xf32>
    %3 = tpu.matmul %1, %2, %cst {dimension_numbers = #tpu.dot_dimension_numbers<[1], [0], [0], [1], [0, 0, 1, 1], [], []>} : vector<8x128xbf16>, vector<128x128xbf16>, vector<8x128xf32> -> vector<8x128xf32>
    %c0_3 = arith.constant 0 : index
    %c0_4 = arith.constant 0 : index
    %4 = vector.load %arg2[%c0_3, %c0_4] : memref<1x128xf32, #tpu.memory_space<vmem>>, vector<1x128xf32>
    %5 = vector.broadcast %4 : vector<1x128xf32> to vector<8x128xf32>
    %6 = arith.addf %3, %5 : vector<8x128xf32>
    %7 = arith.truncf %6 : vector<8x128xf32> to vector<8x128xbf16>
    %c0_5 = arith.constant 0 : index
    %c0_6 = arith.constant 0 : index
    %8 = vector.load %arg3[%c0_5, %c0_6] : memref<128x1024xbf16, #tpu.memory_space<vmem>>, vector<128x1024xbf16>
    %cst_7 = arith.constant dense<0.000000e+00> : vector<8x1024xf32>
    %9 = tpu.matmul %7, %8, %cst_7 {dimension_numbers = #tpu.dot_dimension_numbers<[1], [0], [0], [1], [0, 0, 1, 1], [], []>} : vector<8x128xbf16>, vector<128x1024xbf16>, vector<8x1024xf32> -> vector<8x1024xf32>
    %c0_8 = arith.constant 0 : index
    %c0_9 = arith.constant 0 : index
    %10 = vector.load %arg4[%c0_8, %c0_9] : memref<1x1024xf32, #tpu.memory_space<vmem>>, vector<1x1024xf32>
    %11 = vector.broadcast %10 : vector<1x1024xf32> to vector<8x1024xf32>
    %12 = arith.addf %9, %11 : vector<8x1024xf32>
    %cst_10 = arith.constant 0.000000e+00 : f32
    %13 = vector.broadcast %cst_10 : f32 to vector<8x1024xf32>
    %14 = arith.maximumf %12, %13 : vector<8x1024xf32>
    %15 = arith.truncf %14 : vector<8x1024xf32> to vector<8x1024xbf16>
    %c0_11 = arith.constant 0 : index
    %c0_12 = arith.constant 0 : index
    %16 = vector.load %arg5[%c0_11, %c0_12] : memref<1024x512xbf16, #tpu.memory_space<vmem>>, vector<1024x512xbf16>
    %cst_13 = arith.constant dense<0.000000e+00> : vector<8x512xf32>
    %17 = tpu.matmul %15, %16, %cst_13 {dimension_numbers = #tpu.dot_dimension_numbers<[1], [0], [0], [1], [0, 0, 1, 1], [], []>} : vector<8x1024xbf16>, vector<1024x512xbf16>, vector<8x512xf32> -> vector<8x512xf32>
    %c0_14 = arith.constant 0 : index
    %c0_15 = arith.constant 0 : index
    %18 = vector.load %arg6[%c0_14, %c0_15] : memref<1x512xf32, #tpu.memory_space<vmem>>, vector<1x512xf32>
    %19 = vector.broadcast %18 : vector<1x512xf32> to vector<8x512xf32>
    %20 = arith.addf %17, %19 : vector<8x512xf32>
    %cst_16 = arith.constant 0.000000e+00 : f32
    %21 = vector.broadcast %cst_16 : f32 to vector<8x512xf32>
    %22 = arith.maximumf %20, %21 : vector<8x512xf32>
    %23 = arith.truncf %22 : vector<8x512xf32> to vector<8x512xbf16>
    %c0_17 = arith.constant 0 : index
    %c0_18 = arith.constant 0 : index
    %24 = vector.load %arg7[%c0_17, %c0_18] : memref<512x128xbf16, #tpu.memory_space<vmem>>, vector<512x128xbf16>
    %cst_19 = arith.constant dense<0.000000e+00> : vector<8x128xf32>
    %25 = tpu.matmul %23, %24, %cst_19 {dimension_numbers = #tpu.dot_dimension_numbers<[1], [0], [0], [1], [0, 0, 1, 1], [], []>} : vector<8x512xbf16>, vector<512x128xbf16>, vector<8x128xf32> -> vector<8x128xf32>
    %c0_20 = arith.constant 0 : index
    %c0_21 = arith.constant 0 : index
    %26 = vector.load %arg8[%c0_20, %c0_21] : memref<1x128xf32, #tpu.memory_space<vmem>>, vector<1x128xf32>
    %27 = vector.broadcast %26 : vector<1x128xf32> to vector<8x128xf32>
    %28 = arith.addf %25, %27 : vector<8x128xf32>
    %c0_22 = arith.constant 0 : index
    %c0_23 = arith.constant 0 : index
    %29 = vector.load %arg9[%c0_22, %c0_23] : memref<8x128xf32, #tpu.memory_space<vmem>>, vector<8x128xf32>
    tpu.vector_store %arg9[%c0_22, %c0_23], %28 {strides = array<i32>} : memref<8x128xf32, #tpu.memory_space<vmem>>, vector<8x128xf32>,
    return
  }
}

</mosaic_0001>

<bundles_post_ra>
// kernel: model_forward.1
= control target key start
LH: loop header
LB: loop body
LE: loop exit
PB: predicated region body
PF: predicated region fallthrough
CT: control target
= control target key end

     0   :  { %14 = vsyncpa [#allocation3], 0  ;;  %s4213_s0 = inlined_call_operand.vmem [shape: f32[8,128], index: 0, kind: input, shape index: {}]   ;;  %s4214_s1 = inlined_call_operand.vmem [shape: bf16[128,128], index: 1, kind: input, shape index: {}]   ;;  %s4215_s2 = inlined_call_operand.vmem [shape: f32[1,128], index: 2, kind: input, shape index: {}]   ;;  %s4216_s3 = inlined_call_operand.hbm [shape: bf16[128,1024], index: 3, kind: input, shape index: {}]   ;;  %s4217_s4 = inlined_call_operand.vmem [shape: f32[1,1024], index: 4, kind: input, shape index: {}]   ;;  %s4218_s5 = inlined_call_operand.hbm [shape: bf16[1024,512], index: 5, kind: input, shape index: {}]   ;;  %s4219_s6 = inlined_call_operand.vmem [shape: f32[1,512], index: 6, kind: input, shape index: {}]   ;;  %s4220_s7 = inlined_call_operand.hbm [shape: bf16[512,128], index: 7, kind: input, shape index: {}]   ;;  %s4221_s8 = inlined_call_operand.vmem [shape: f32[1,128], index: 8, kind: input, shape index: {}]   ;;  %s4222_s9 = inlined_call_operand.vmem [shape: f32[8,128], index: 9, kind: output, shape index: {}]  }
   0x1   :  { %15 = vsyncpa [#allocation5], 0  ;;  %s4007_s30 = smov [#allocation4]   ;;  %s3937_s13 = scalar_lea.hbm %s4218_s5, 32768 }
   0x2   :  { %s41_s10 = sshll.u32 %s4007_s30, 4  ;;  %p3938_p0 = scmp.ne.s32.totalorder %s4218_s5, %s3937_s13  ;;  %s42_s10 = int_to_ptr.vmem [resolvable:$true] %s41_s10 }
   0x3   :  { %p3941_p1 = scmp.lt.u32.totalorder %s3937_s13, %s4218_s5 }
   0x5   :  { %p3943_p2 = pnand %p3941_p1, %p3938_p0 }
   0x7   :  { %3946 = shalt.err (!%p3943_p2)
}
   0x8   :  { %s3947_s18 = scalar_lea.vmem %s42_s10, 32768  ;;  %p3952_p4 = scmp.lt.s32.totalorder %s42_s10, %s42_s10 }
   0x9   :  { %p3948_p3 = scmp.ne.s32.totalorder %s42_s10, %s3947_s18  ;;  %p3953_p5 = scmp.lt.s32.totalorder %s3947_s18, %s3947_s18 }
   0xb   :  { %p3954_p6 = por %p3953_p5, %p3952_p4 }
   0xd   :  { %p3955_p7 = pnand %p3954_p6, %p3948_p3 }
   0xf   :  { %3958 = shalt.err (!%p3955_p7)
}
  0x10   :  { %s4008_s19 = smov 256   ;;  %s4009_s20 = smov 16  }
  0x11   :  { %47 = dma.hbm_to_vmem [thread:$0]  %s4218_s5, 32768, %s42_s10, [#allocation5], %s4008_s19, %s4008_s19, %s4009_s20  }
  0x12   :  { %s4010_s23 = smov [#allocation2]   ;;  %s3959_s27 = scalar_lea.hbm %s4216_s3, 8192 }
  0x13   :  { %s27_s24 = sshll.u32 %s4010_s23, 4  ;;  %p3960_p8 = scmp.ne.s32.totalorder %s4216_s3, %s3959_s27  ;;  %s28_s24 = int_to_ptr.vmem [resolvable:$true] %s27_s24 }
  0x14   :  { %p3963_p9 = scmp.lt.u32.totalorder %s3959_s27, %s4216_s3 }
  0x16   :  { %p3965_p10 = pnand %p3963_p9, %p3960_p8 }
  0x18   :  { %3968 = shalt.err (!%p3965_p10)
}
  0x19   :  { %s3969_s12 = scalar_lea.vmem %s28_s24, 8192  ;;  %p3974_p12 = scmp.lt.s32.totalorder %s28_s24, %s28_s24 }
  0x1a   :  { %p3970_p11 = scmp.ne.s32.totalorder %s28_s24, %s3969_s12  ;;  %p3975_p13 = scmp.lt.s32.totalorder %s3969_s12, %s3969_s12 }
  0x1c   :  { %p3976_p0 = por %p3975_p13, %p3974_p12 }
  0x1e   :  { %p3977_p1 = pnand %p3976_p0, %p3970_p11 }
  0x20   :  { %3980 = shalt.err (!%p3977_p1)
}
  0x21   :  { %s4011_s5 = smov 512   ;;  %s4012_s10 = smov 32  }
  0x22   :  { %33 = dma.hbm_to_vmem [thread:$0]  %s4216_s3, 8192, %s28_s24, [#allocation3], %s4011_s5, %s4011_s5, %s4012_s10  }
  0x23   :  { %s4013_s15 = smov [#allocation6]   ;;  %s3981_s19 = scalar_lea.hbm %s4220_s7, 4096 }
  0x24   :  { %s55_s16 = sshll.u32 %s4013_s15, 4  ;;  %p3982_p2 = scmp.ne.s32.totalorder %s4220_s7, %s3981_s19  ;;  %s56_s16 = int_to_ptr.vmem [resolvable:$true] %s55_s16 }
  0x25   :  { %p3985_p3 = scmp.lt.u32.totalorder %s3981_s19, %s4220_s7 }
  0x27   :  { %p3987_p4 = pnand %p3985_p3, %p3982_p2 }
  0x29   :  { %3990 = shalt.err (!%p3987_p4)
}
  0x2a   :  { %s3991_s25 = scalar_lea.vmem %s56_s16, 4096  ;;  %p3996_p6 = scmp.lt.s32.totalorder %s56_s16, %s56_s16 }
  0x2b   :  { %p3992_p5 = scmp.ne.s32.totalorder %s56_s16, %s3991_s25  ;;  %p3997_p7 = scmp.lt.s32.totalorder %s3991_s25, %s3991_s25 }
  0x2d   :  { %p3998_p8 = por %p3997_p7, %p3996_p6 }
  0x2f   :  { %p3999_p9 = pnand %p3998_p8, %p3992_p5 }
  0x31   :  { %4002 = shalt.err (!%p3999_p9)
}
  0x32   :  { %s4014_s3 = smov 64   ;;  %s4015_s24 = smov 4  }
  0x33   :  { %61 = dma.hbm_to_vmem [thread:$0]  %s4220_s7, 4096, %s56_s16, [#allocation5], %s4014_s3, %s4014_s3, %s4015_s24  }
  0x34   :  { %4003 = dma.done.wait [#allocation3], 8192  }
  0x35   :  { %4004 = vsyncadd [#allocation3], 4294959104 }
  0x36   :  { %4005 = dma.done.wait [#allocation5], 36864  }
  0x37   :  { %4006 = vsyncadd [#allocation5], 4294930432  ;;  %v4016_v0 = vmov 0.0   ;;  %vm4017_vm0 = vmmov 0   ;;  %v3513_v1 = vld [vmem:[%s4214_s1] sm:$0xff]   ;;  %v3514_v2 = vld [vmem:[%s4214_s1 + $0x8] sm:$0xff]  }
  0x38   :  { %3453 = vmatprep.subr.bf16.mxu0 %v4016_v0  ;;  %3469 = vmatprep.mubr.msk.bf16.mxu0 %vm4017_vm0, %v4016_v0  ;;  %v3515_v3 = vld [vmem:[%s4214_s1 + $0x10] sm:$0xff]   ;;  %v188_v4 = vld [vmem:[#allocation2] sm:$0xff]  ;;  %v3516_v9 = vld [vmem:[%s4214_s1 + $0x18] sm:$0xff]  }
  0x39   :  { %3454 = vmatpush3.bf16.msra.mxu0 %v3513_v1  ;;  %v192_v5 = vld [vmem:[#allocation2 + $0x20] sm:$0xff]  ;;  %v3518_v20 = vld [vmem:[%s4214_s1 + $0x28] sm:$0xff]   ;;  %v3519_v24 = vld [vmem:[%s4214_s1 + $0x30] sm:$0xff]  }
  0x3a   :  { %3455 = vmatprep.subr.bf16.mxu0 %v4016_v0  ;;  %v3048_v6 = vcombine.high %v188_v4, %v192_v5  ;;  %v3047_v7 = vcombine.low %v188_v4, %v192_v5  ;;  %v196_v8 = vld [vmem:[#allocation2 + $0x40] sm:$0xff]  ;;  %v189_v29 = vld [vmem:[#allocation2 + $0x8] sm:$0xff]  ;;  %v3520_v31 = vld [vmem:[%s4214_s1 + $0x38] sm:$0xff]  }
  0x3b   :  { %v200_v10 = vld [vmem:[#allocation2 + $0x60] sm:$0xff]  ;;  %v193_v30 = vld [vmem:[#allocation2 + $0x28] sm:$0xff] }
  0x3c   :  { %614 = vmatprep.subr.bf16.mxu1 %v3048_v6  ;;  %v3056_v11 = vcombine.high %v196_v8, %v200_v10  ;;  %v204_v12 = vld [vmem:[#allocation2 + $0x80] sm:$0xff]  ;;  %v3055_v14 = vcombine.low %v196_v8, %v200_v10  ;;  %v197_v37 = vld [vmem:[#allocation2 + $0x48] sm:$0xff]  ;;  %v3050_v39 = vcombine.high %v189_v29, %v193_v30  ;;  %v3049_v43 = vcombine.low %v189_v29, %v193_v30 }
  0x3d   :  { %3456 = vmatpush3.bf16.msra.mxu0 %v3514_v2  ;;  %v208_v13 = vld [vmem:[#allocation2 + $0xa0] sm:$0xff]  ;;  %615 = vmatpush1.bf16.msra.mxu1 %v3047_v7  ;;  %v201_v38 = vld [vmem:[#allocation2 + $0x68] sm:$0xff] }
  0x3e   :  { %3457 = vmatprep.subr.bf16.mxu0 %v4016_v0  ;;  %616 = vmatprep.subr.bf16.mxu1 %v3056_v11  ;;  %v3064_v15 = vcombine.high %v204_v12, %v208_v13  ;;  %v3517_v16 = vld [vmem:[%s4214_s1 + $0x20] sm:$0xff]   ;;  %v3063_v19 = vcombine.low %v204_v12, %v208_v13  ;;  %v205_v44 = vld [vmem:[#allocation2 + $0x88] sm:$0xff]  ;;  %v3058_v46 = vcombine.high %v197_v37, %v201_v38  ;;  %v190_v11 = vld [vmem:[#allocation2 + $0x10] sm:$0xff] }
  0x3f   :  { %v212_v17 = vld [vmem:[#allocation2 + $0xc0] sm:$0xff]  ;;  %v209_v45 = vld [vmem:[#allocation2 + $0xa8] sm:$0xff]  ;;  %v3057_v48 = vcombine.low %v197_v37, %v201_v38  ;;  %v194_v12 = vld [vmem:[#allocation2 + $0x30] sm:$0xff] }
  0x40   :  { %v216_v18 = vld [vmem:[#allocation2 + $0xe0] sm:$0xff]  ;;  %v213_v49 = vld [vmem:[#allocation2 + $0xc8] sm:$0xff]  ;;  %v3066_v51 = vcombine.high %v205_v44, %v209_v45  ;;  %v3065_v52 = vcombine.low %v205_v44, %v209_v45  ;;  %v191_v13 = vld [vmem:[#allocation2 + $0x18] sm:$0xff] }
  0x41   :  { %3458 = vmatpush3.bf16.msra.mxu0 %v3515_v3  ;;  %617 = vmatpush1.bf16.msra.mxu1 %v3055_v14  ;;  %v3072_v21 = vcombine.high %v212_v17, %v216_v18  ;;  %v220_v22 = vld [vmem:[#allocation2 + $0x100] sm:$0xff]  ;;  %v3071_v25 = vcombine.low %v212_v17, %v216_v18  ;;  %v217_v50 = vld [vmem:[#allocation2 + $0xe8] sm:$0xff]  ;;  %v3052_v14 = vcombine.high %v190_v11, %v194_v12  ;;  %v219_v44 = vld [vmem:[#allocation2 + $0xf8] sm:$0xff] }
  0x42   :  { %3459 = vmatprep.subr.bf16.mxu0 %v4016_v0  ;;  %618 = vmatprep.subr.bf16.mxu1 %v3064_v15  ;;  %v224_v23 = vld [vmem:[#allocation2 + $0x120] sm:$0xff]  ;;  %v221_v53 = vld [vmem:[#allocation2 + $0x108] sm:$0xff]  ;;  %v3074_v55 = vcombine.high %v213_v49, %v217_v50  ;;  %v3073_v56 = vcombine.low %v213_v49, %v217_v50  ;;  %v195_v15 = vld [vmem:[#allocation2 + $0x38] sm:$0xff] }
  0x43   :  { %v228_v26 = vld [vmem:[#allocation2 + $0x140] sm:$0xff]  ;;  %v3080_v28 = vcombine.high %v220_v22, %v224_v23  ;;  %v3079_v33 = vcombine.low %v220_v22, %v224_v23  ;;  %v225_v54 = vld [vmem:[#allocation2 + $0x128] sm:$0xff]  ;;  %v3053_v17 = vcombine.low %v191_v13, %v195_v15  ;;  %v3054_v18 = vcombine.high %v191_v13, %v195_v15  ;;  %v202_v23 = vld [vmem:[#allocation2 + $0x70] sm:$0xff] }
  0x44   :  { %v232_v27 = vld [vmem:[#allocation2 + $0x160] sm:$0xff]  ;;  %v229_v57 = vld [vmem:[#allocation2 + $0x148] sm:$0xff]  ;;  %v3082_v59 = vcombine.high %v221_v53, %v225_v54  ;;  %v3081_v60 = vcombine.low %v221_v53, %v225_v54  ;;  %v222_v49 = vld [vmem:[#allocation2 + $0x110] sm:$0xff] }
  0x45   :  { %3460 = vmatpush3.bf16.msra.mxu0 %v3516_v9  ;;  %619 = vmatpush1.bf16.msra.mxu1 %v3063_v19  ;;  %v74_v32 = vld [vmem:[%s4213_s0] sm:$0xff]  ;;  %v3088_v36 = vcombine.high %v228_v26, %v232_v27  ;;  %v3087_v40 = vcombine.low %v228_v26, %v232_v27  ;;  %v233_v58 = vld [vmem:[#allocation2 + $0x168] sm:$0xff]  ;;  %v4018_v19 = vmov 0   ;;  %v226_v50 = vld [vmem:[#allocation2 + $0x130] sm:$0xff] }
  0x46   :  { %3461 = vmatprep.subr.bf16.mxu0 %v4016_v0  ;;  %620 = vmatprep.subr.bf16.mxu1 %v3072_v21  ;;  %v236_v34 = vld [vmem:[#allocation2 + $0x180] sm:$0xff]  ;;  %v75_v41 = vpack.c.bf16 %v74_v32, %v74_v32  ;;  %v237_v61 = vld [vmem:[#allocation2 + $0x188] sm:$0xff]  ;;  %v3090_v63 = vcombine.high %v229_v57, %v233_v58  ;;  %v198_v21 = vld [vmem:[#allocation2 + $0x50] sm:$0xff] }
  0x47   :  { %v240_v35 = vld [vmem:[#allocation2 + $0x1a0] sm:$0xff]  ;;  %v241_v62 = vld [vmem:[#allocation2 + $0x1a8] sm:$0xff]  ;;  %646 = vmatprep.mubr.bf16.mxu1 %v4018_v19  ;;  %v3059_v37 = vcombine.low %v198_v21, %v202_v23 }
  0x48   :  { %v3096_v42 = vcombine.high %v236_v34, %v240_v35  ;;  %v3095_v47 = vcombine.low %v236_v34, %v240_v35  ;;  %v3098_v1 = vcombine.high %v237_v61, %v241_v62  ;;  %v3097_v2 = vcombine.low %v237_v61, %v241_v62  ;;  %v244_v3 = vld [vmem:[#allocation2 + $0x1c0] sm:$0xff]  ;;  %v245_v5 = vld [vmem:[#allocation2 + $0x1c8] sm:$0xff]  ;;  %v210_v34 = vld [vmem:[#allocation2 + $0xb0] sm:$0xff] }
  0x49   :  { %3462 = vmatpush3.bf16.msra.mxu0 %v3517_v16  ;;  %621 = vmatpush1.bf16.msra.mxu1 %v3071_v25  ;;  %v248_v4 = vld [vmem:[#allocation2 + $0x1e0] sm:$0xff]  ;;  %v249_v7 = vld [vmem:[#allocation2 + $0x1e8] sm:$0xff]  ;;  %v3051_v16 = vcombine.low %v190_v11, %v194_v12  ;;  %v203_v25 = vld [vmem:[#allocation2 + $0x78] sm:$0xff]  ;;  %v3083_v61 = vcombine.low %v222_v49, %v226_v50 }
  0x4a   :  { %3463 = vmatprep.subr.bf16.mxu0 %v4016_v0  ;;  %622 = vmatprep.subr.bf16.mxu1 %v3080_v28  ;;  %v3104_v6 = vcombine.high %v244_v3, %v248_v4  ;;  %v3105_v8 = vcombine.low %v245_v5, %v249_v7  ;;  %v3106_v9 = vcombine.high %v245_v5, %v249_v7  ;;  %v207_v35 = vld [vmem:[#allocation2 + $0x98] sm:$0xff] }
  0x4b   :  { %v3103_v10 = vcombine.low %v244_v3, %v248_v4  ;;  %v239_v3 = vld [vmem:[#allocation2 + $0x198] sm:$0xff] }
  0x4c   :  { %v243_v4 = vld [vmem:[#allocation2 + $0x1b8] sm:$0xff] }
  0x4d   :  { %3464 = vmatpush3.bf16.msra.mxu0 %v3518_v20  ;;  %623 = vmatpush1.bf16.msra.mxu1 %v3079_v33  ;;  %v3038_v20 = vld [vmem:[%s4215_s2] ss:$0 sm:$0xff]  ;;  %v206_v33 = vld [vmem:[#allocation2 + $0x90] sm:$0xff]  ;;  %v247_v11 = vld [vmem:[#allocation2 + $0x1d8] sm:$0xff] }
  0x4e   :  { %3465 = vmatprep.subr.bf16.mxu0 %v4016_v0  ;;  %624 = vmatprep.subr.bf16.mxu1 %v3088_v36  ;;  %v211_v36 = vld [vmem:[#allocation2 + $0xb8] sm:$0xff]  ;;  %v3067_v45 = vcombine.low %v206_v33, %v210_v34 }
  0x4f   :  { %v251_v12 = vld [vmem:[#allocation2 + $0x1f8] sm:$0xff] }
  0x51   :  { %3466 = vmatpush3.bf16.msra.mxu0 %v3519_v24  ;;  %625 = vmatpush1.bf16.msra.mxu1 %v3087_v40  ;;  %v199_v24 = vld [vmem:[#allocation2 + $0x58] sm:$0xff]  ;;  %v3070_v40 = vcombine.high %v207_v35, %v211_v36 }
  0x52   :  { %3467 = vmatprep.subr.bf16.mxu0 %v4016_v0  ;;  %626 = vmatprep.subr.bf16.mxu1 %v3096_v42  ;;  %v3089_v0 = vcombine.low %v229_v57, %v233_v58  ;;  %v3062_v32 = vcombine.high %v199_v24, %v203_v25  ;;  %v3061_v38 = vcombine.low %v199_v24, %v203_v25  ;;  %v218_v42 = vld [vmem:[#allocation2 + $0xf0] sm:$0xff]  ;;  %v3532_v24 = vld [vmem:[#allocation4 + $0x2c] ss:$16 sps:$4 sm:$0xff]  }
  0x53   :  { %v230_v57 = vld [vmem:[#allocation2 + $0x150] sm:$0xff] }
  0x54   :  { %v234_v58 = vld [vmem:[#allocation2 + $0x170] sm:$0xff] }
  0x55   :  { %3468 = vmatpush3.bf16.msra.mxu0 %v3520_v31  ;;  %627 = vmatpush1.bf16.msra.mxu1 %v3095_v47  ;;  %v3060_v31 = vcombine.high %v198_v21, %v202_v23  ;;  %v3091_v5 = vcombine.low %v230_v57, %v234_v58  ;;  %v3521_v21 = vld [vmem:[#allocation4] ss:$16 sps:$4 sm:$0xff]   ;;  %v3529_v23 = vld [vmem:[#allocation4 + $0x24] ss:$16 sps:$4 sm:$0xff]  }
  0x56   :  { %655 = vmatprep.subr.bf16.mxu0 %v3050_v39  ;;  %628 = vmatprep.subr.bf16.mxu1 %v3104_v6  ;;  %v3068_v39 = vcombine.high %v206_v33, %v210_v34  ;;  %v3527_v25 = vld [vmem:[#allocation4 + $0x20] ss:$16 sps:$4 sm:$0xff]   ;;  %v3544_v33 = vld [vmem:[#allocation4 + $0x6c] ss:$16 sps:$4 sm:$0xff]  }
  0x57   :  { %v3539_v34 = vld [vmem:[#allocation4 + $0x60] ss:$16 sps:$4 sm:$0xff]  }
  0x58   :  { %3470 = vmatmul.mubr.bf16.vlgmr.msra.gmra.mrb[0].mxu0 %v75_v41  ;;  %v214_v41 = vld [vmem:[#allocation2 + $0xd0] sm:$0xff] }
  0x59   :  { %656 = vmatpush1.bf16.msra.mxu0 %v3049_v43  ;;  %629 = vmatpush1.bf16.msra.mxu1 %v3103_v10  ;;  %v215_v43 = vld [vmem:[#allocation2 + $0xd8] sm:$0xff]  ;;  %v3076_v47 = vcombine.high %v214_v41, %v218_v42  ;;  %v3075_v53 = vcombine.low %v214_v41, %v218_v42  ;;  %v250_v10 = vld [vmem:[#allocation2 + $0x1f0] sm:$0xff] }
  0x5a   :  { %657 = vmatprep.subr.bf16.mxu0 %v3058_v46  ;;  %687 = vmatprep.mubr.bf16.mxu0 %v4018_v19  ;;  %v3069_v46 = vcombine.low %v207_v35, %v211_v36  ;;  %v3077_v54 = vcombine.low %v215_v43, %v219_v44  ;;  %v3547_v35 = vld [vmem:[#allocation4 + $0x84] ss:$16 sps:$4 sm:$0xff]   ;;  %v3550_v36 = vld [vmem:[#allocation4 + $0x8c] ss:$16 sps:$4 sm:$0xff]   ;;  %v3551_v41 = vld [vmem:[#allocation4 + $0xa0] ss:$16 sps:$4 sm:$0xff]  }
  0x5b   :  { %696 = vmatprep.subr.bf16.mxu1 %v3052_v14  ;;  %v3101_v14 = vcombine.low %v239_v3, %v243_v4  ;;  %v3554_v42 = vld [vmem:[#allocation4 + $0xa8] ss:$16 sps:$4 sm:$0xff]  }
  0x5d   :  { %658 = vmatpush1.bf16.msra.mxu0 %v3057_v48  ;;  %v3078_v48 = vcombine.high %v215_v43, %v219_v44  ;;  %v3559_v43 = vld [vmem:[#allocation4 + $0xc4] ss:$16 sps:$4 sm:$0xff]   ;;  %v3562_v44 = vld [vmem:[#allocation4 + $0xcc] ss:$16 sps:$4 sm:$0xff]  }
  0x5e   :  { %659 = vmatprep.subr.bf16.mxu0 %v3066_v51  ;;  %v223_v51 = vld [vmem:[#allocation2 + $0x118] sm:$0xff] }
  0x61   :  { %660 = vmatpush1.bf16.msra.mxu0 %v3065_v52  ;;  %v227_v52 = vld [vmem:[#allocation2 + $0x138] sm:$0xff] }
  0x62   :  { %661 = vmatprep.subr.bf16.mxu0 %v3074_v55  ;;  %v3084_v55 = vcombine.high %v222_v49, %v226_v50  ;;  %v3085_v62 = vcombine.low %v223_v51, %v227_v52  ;;  %v3563_v49 = vld [vmem:[#allocation4 + $0xe0] ss:$16 sps:$4 sm:$0xff]   ;;  %v3566_v50 = vld [vmem:[#allocation4 + $0xe8] ss:$16 sps:$4 sm:$0xff]  }
  0x65   :  { %662 = vmatpush1.bf16.msra.mxu0 %v3073_v56  ;;  %v3086_v56 = vcombine.high %v223_v51, %v227_v52  ;;  %v3571_v51 = vld [vmem:[#allocation4 + $0x104] ss:$16 sps:$4 sm:$0xff]   ;;  %v3574_v52 = vld [vmem:[#allocation4 + $0x10c] ss:$16 sps:$4 sm:$0xff]  }
  0x66   :  { %663 = vmatprep.subr.bf16.mxu0 %v3082_v59  ;;  %v231_v59 = vld [vmem:[#allocation2 + $0x158] sm:$0xff] }
  0x69   :  { %664 = vmatpush1.bf16.msra.mxu0 %v3081_v60  ;;  %v235_v60 = vld [vmem:[#allocation2 + $0x178] sm:$0xff] }
  0x6a   :  { %665 = vmatprep.subr.bf16.mxu0 %v3090_v63  ;;  %v3092_v63 = vcombine.high %v230_v57, %v234_v58  ;;  %v3093_v6 = vcombine.low %v231_v59, %v235_v60  ;;  %v3575_v57 = vld [vmem:[#allocation4 + $0x120] ss:$16 sps:$4 sm:$0xff]   ;;  %v3578_v58 = vld [vmem:[#allocation4 + $0x128] ss:$16 sps:$4 sm:$0xff]  }
  0x6d   :  { %666 = vmatpush1.bf16.msra.mxu0 %v3089_v0  ;;  %v3094_v0 = vcombine.high %v231_v59, %v235_v60  ;;  %v3583_v59 = vld [vmem:[#allocation4 + $0x144] ss:$16 sps:$4 sm:$0xff]   ;;  %v3586_v60 = vld [vmem:[#allocation4 + $0x14c] ss:$16 sps:$4 sm:$0xff]  }
  0x6e   :  { %667 = vmatprep.subr.bf16.mxu0 %v3098_v1  ;;  %v238_v1 = vld [vmem:[#allocation2 + $0x190] sm:$0xff] }
  0x71   :  { %668 = vmatpush1.bf16.msra.mxu0 %v3097_v2  ;;  %v242_v2 = vld [vmem:[#allocation2 + $0x1b0] sm:$0xff] }
  0x72   :  { %669 = vmatprep.subr.bf16.mxu0 %v3106_v9  ;;  %v3100_v7 = vcombine.high %v238_v1, %v242_v2  ;;  %v246_v9 = vld [vmem:[#allocation2 + $0x1d0] sm:$0xff]  ;;  %v3099_v13 = vcombine.low %v238_v1, %v242_v2  ;;  %v3590_v2 = vld [vmem:[#allocation4 + $0x168] ss:$16 sps:$4 sm:$0xff]  }
  0x73   :  { %v3108_v15 = vcombine.high %v246_v9, %v250_v10  ;;  %v3587_v1 = vld [vmem:[#allocation4 + $0x160] ss:$16 sps:$4 sm:$0xff]  }
  0x75   :  { %670 = vmatpush1.bf16.msra.mxu0 %v3105_v8  ;;  %v3102_v8 = vcombine.high %v239_v3, %v243_v4  ;;  %v3595_v3 = vld [vmem:[#allocation4 + $0x184] ss:$16 sps:$4 sm:$0xff]   ;;  %v3598_v4 = vld [vmem:[#allocation4 + $0x18c] ss:$16 sps:$4 sm:$0xff]  }
  0x76   :  { %737 = vmatprep.subr.bf16.mxu0 %v3054_v18  ;;  %v3109_v18 = vcombine.low %v247_v11, %v251_v12 }
 0x12b   :  { %v181_v22 = vpop.f32.mrb[0].mxu0 }
 0x12c   :  { %v182_v26 = vadd.f32 %v3038_v20, %v181_v22  ;;  %v3471_v27 = vpop.f32.mrb[1].mxu0  ;;  %v3526_v20 = vld [vmem:[#allocation4 + $0xc] ss:$16 sps:$4 sm:$0xff]   ;;  %v3524_v22 = vld [vmem:[#allocation4 + $0x8] ss:$16 sps:$4 sm:$0xff]  }
 0x12d   :  { %v184_v28 = vpop.f32.mrb[2].mxu0  ;;  %v3535_v27 = vld [vmem:[#allocation4 + $0x44] ss:$16 sps:$4 sm:$0xff]  }
 0x12e   :  { %v4144_v29 = vpack.c.bf16 %v182_v26, %v182_v26  ;;  %v3472_v30 = vpop.f32.mrb[3].mxu0  ;;  %v3530_v26 = vld [vmem:[#allocation4 + $0x28] ss:$16 sps:$4 sm:$0xff]   ;;  %v3538_v28 = vld [vmem:[#allocation4 + $0x4c] ss:$16 sps:$4 sm:$0xff]  }
 0x12f   :  { %v3533_v30 = vld [vmem:[#allocation4 + $0x40] ss:$16 sps:$4 sm:$0xff]  }
 0x130   :  { %647 = vmatmul.mubr.bf16.vlgmr.msra.gmra.mrb[0].mxu1 %v4144_v29  ;;  %688 = vmatmul.mubr.bf16.vlgmr.msra.gmra.mrb[4].mxu0 %v4144_v29 }
 0x131   :  { %697 = vmatpush1.bf16.msra.mxu1 %v3051_v16  ;;  %738 = vmatpush1.bf16.msra.mxu0 %v3053_v17  ;;  %v3110_v16 = vcombine.high %v247_v11, %v251_v12  ;;  %v3107_v17 = vcombine.low %v246_v9, %v250_v10  ;;  %v3599_v9 = vld [vmem:[#allocation4 + $0x1a0] ss:$16 sps:$4 sm:$0xff]   ;;  %v3602_v10 = vld [vmem:[#allocation4 + $0x1a8] ss:$16 sps:$4 sm:$0xff]   ;;  %v3607_v11 = vld [vmem:[#allocation4 + $0x1c4] ss:$16 sps:$4 sm:$0xff]  }
 0x132   :  { %698 = vmatprep.subr.bf16.mxu1 %v3060_v31  ;;  %739 = vmatprep.subr.bf16.mxu0 %v3062_v32  ;;  %v3536_v31 = vld [vmem:[#allocation4 + $0x48] ss:$16 sps:$4 sm:$0xff]   ;;  %v3541_v32 = vld [vmem:[#allocation4 + $0x64] ss:$16 sps:$4 sm:$0xff]   ;;  %v3610_v12 = vld [vmem:[#allocation4 + $0x1cc] ss:$16 sps:$4 sm:$0xff]  }
 0x133   :  { %728 = vmatprep.mubr.bf16.mxu1 %v4018_v19  ;;  %769 = vmatprep.mubr.bf16.mxu0 %v4018_v19  ;;  %v3523_v19 = vld [vmem:[#allocation4 + $0x4] ss:$16 sps:$4 sm:$0xff]  }
 0x135   :  { %699 = vmatpush1.bf16.msra.mxu1 %v3059_v37  ;;  %740 = vmatpush1.bf16.msra.mxu0 %v3061_v38  ;;  %v3545_v37 = vld [vmem:[#allocation4 + $0x80] ss:$16 sps:$4 sm:$0xff]   ;;  %v3548_v38 = vld [vmem:[#allocation4 + $0x88] ss:$16 sps:$4 sm:$0xff]  }
 0x136   :  { %700 = vmatprep.subr.bf16.mxu1 %v3068_v39  ;;  %741 = vmatprep.subr.bf16.mxu0 %v3070_v40  ;;  %v3553_v39 = vld [vmem:[#allocation4 + $0xa4] ss:$16 sps:$4 sm:$0xff]   ;;  %v3556_v40 = vld [vmem:[#allocation4 + $0xac] ss:$16 sps:$4 sm:$0xff]  }
 0x139   :  { %701 = vmatpush1.bf16.msra.mxu1 %v3067_v45  ;;  %742 = vmatpush1.bf16.msra.mxu0 %v3069_v46  ;;  %v3557_v45 = vld [vmem:[#allocation4 + $0xc0] ss:$16 sps:$4 sm:$0xff]   ;;  %v3560_v46 = vld [vmem:[#allocation4 + $0xc8] ss:$16 sps:$4 sm:$0xff]  }
 0x13a   :  { %702 = vmatprep.subr.bf16.mxu1 %v3076_v47  ;;  %743 = vmatprep.subr.bf16.mxu0 %v3078_v48  ;;  %v3565_v47 = vld [vmem:[#allocation4 + $0xe4] ss:$16 sps:$4 sm:$0xff]   ;;  %v3568_v48 = vld [vmem:[#allocation4 + $0xec] ss:$16 sps:$4 sm:$0xff]  }
 0x13d   :  { %703 = vmatpush1.bf16.msra.mxu1 %v3075_v53  ;;  %744 = vmatpush1.bf16.msra.mxu0 %v3077_v54  ;;  %v3569_v53 = vld [vmem:[#allocation4 + $0x100] ss:$16 sps:$4 sm:$0xff]   ;;  %v3572_v54 = vld [vmem:[#allocation4 + $0x108] ss:$16 sps:$4 sm:$0xff]  }
 0x13e   :  { %704 = vmatprep.subr.bf16.mxu1 %v3084_v55  ;;  %745 = vmatprep.subr.bf16.mxu0 %v3086_v56  ;;  %v3577_v55 = vld [vmem:[#allocation4 + $0x124] ss:$16 sps:$4 sm:$0xff]   ;;  %v3580_v56 = vld [vmem:[#allocation4 + $0x12c] ss:$16 sps:$4 sm:$0xff]  }
 0x141   :  { %705 = vmatpush1.bf16.msra.mxu1 %v3083_v61  ;;  %746 = vmatpush1.bf16.msra.mxu0 %v3085_v62  ;;  %v3581_v61 = vld [vmem:[#allocation4 + $0x140] ss:$16 sps:$4 sm:$0xff]   ;;  %v3584_v62 = vld [vmem:[#allocation4 + $0x148] ss:$16 sps:$4 sm:$0xff]  }
 0x142   :  { %706 = vmatprep.subr.bf16.mxu1 %v3092_v63  ;;  %747 = vmatprep.subr.bf16.mxu0 %v3094_v0  ;;  %v3589_v63 = vld [vmem:[#allocation4 + $0x164] ss:$16 sps:$4 sm:$0xff]   ;;  %v3592_v0 = vld [vmem:[#allocation4 + $0x16c] ss:$16 sps:$4 sm:$0xff]  }
 0x145   :  { %707 = vmatpush1.bf16.msra.mxu1 %v3091_v5  ;;  %748 = vmatpush1.bf16.msra.mxu0 %v3093_v6  ;;  %v3593_v5 = vld [vmem:[#allocation4 + $0x180] ss:$16 sps:$4 sm:$0xff]   ;;  %v3596_v6 = vld [vmem:[#allocation4 + $0x188] ss:$16 sps:$4 sm:$0xff]  }
 0x146   :  { %708 = vmatprep.subr.bf16.mxu1 %v3100_v7  ;;  %749 = vmatprep.subr.bf16.mxu0 %v3102_v8  ;;  %v3601_v7 = vld [vmem:[#allocation4 + $0x1a4] ss:$16 sps:$4 sm:$0xff]   ;;  %v3604_v8 = vld [vmem:[#allocation4 + $0x1ac] ss:$16 sps:$4 sm:$0xff]  }
 0x149   :  { %709 = vmatpush1.bf16.msra.mxu1 %v3099_v13  ;;  %750 = vmatpush1.bf16.msra.mxu0 %v3101_v14  ;;  %v3605_v13 = vld [vmem:[#allocation4 + $0x1c0] ss:$16 sps:$4 sm:$0xff]   ;;  %v3608_v14 = vld [vmem:[#allocation4 + $0x1c8] ss:$16 sps:$4 sm:$0xff]  }
 0x14a   :  { %710 = vmatprep.subr.bf16.mxu1 %v3108_v15  ;;  %751 = vmatprep.subr.bf16.mxu0 %v3110_v16  ;;  %v3613_v15 = vld [vmem:[#allocation4 + $0x1e4] ss:$16 sps:$4 sm:$0xff]   ;;  %v3616_v16 = vld [vmem:[#allocation4 + $0x1ec] ss:$16 sps:$4 sm:$0xff]  }
 0x14d   :  { %711 = vmatpush1.bf16.msra.mxu1 %v3107_v17  ;;  %752 = vmatpush1.bf16.msra.mxu0 %v3109_v18  ;;  %v3611_v17 = vld [vmem:[#allocation4 + $0x1e0] ss:$16 sps:$4 sm:$0xff]   ;;  %v3614_v18 = vld [vmem:[#allocation4 + $0x1e8] ss:$16 sps:$4 sm:$0xff]  }
 0x14e   :  { %2352 = vmatprep.subr.bf16.mxu1 %v3523_v19  ;;  %2516 = vmatprep.subr.bf16.mxu0 %v3526_v20  ;;  %v3619_v19 = vld [vmem:[#allocation4 + $0x204] ss:$16 sps:$4 sm:$0xff]   ;;  %v3622_v20 = vld [vmem:[#allocation4 + $0x20c] ss:$16 sps:$4 sm:$0xff]  }
 0x150   :  { %729 = vmatmul.mubr.bf16.vlgmr.msra.gmra.mrb[4].mxu1 %v4144_v29  ;;  %770 = vmatmul.mubr.bf16.vlgmr.msra.gmra.mrb[8].mxu0 %v4144_v29  ;;  %v3542_v29 = vld [vmem:[#allocation4 + $0x68] ss:$16 sps:$4 sm:$0xff]  }
 0x151   :  { %2353 = vmatpush1.bf16.msra.mxu1 %v3521_v21  ;;  %2517 = vmatpush1.bf16.msra.mxu0 %v3524_v22  ;;  %v254_v21 = vlaneseq }
 0x152   :  { %2354 = vmatprep.subr.bf16.mxu1 %v3529_v23  ;;  %2518 = vmatprep.subr.bf16.mxu0 %v3532_v24  ;;  %v4156_v24 = vld [vmem:[%s4217_s4] sm:$0xff] }
 0x153   :  { %v4150_v22 = vshrl.u32 %v254_v21, 7  ;;  %v3667_v21 = vld [vmem:[#allocation4 + $0x304] ss:$16 sps:$4 sm:$0xff]  }
 0x155   :  { %2355 = vmatpush1.bf16.msra.mxu1 %v3527_v25  ;;  %2519 = vmatpush1.bf16.msra.mxu0 %v3530_v26  ;;  %v256_v23 = vsub.s32 0, %v4150_v22  ;;  %v260_v25 = vsub.s32 1, %v4150_v22  ;;  %v268_v26 = vsub.s32 3, %v4150_v22 }
 0x156   :  { %2356 = vmatprep.subr.bf16.mxu1 %v3535_v27  ;;  %2520 = vmatprep.subr.bf16.mxu0 %v3538_v28 }
 0x157   :  { %v257_v27 = vrot.slane %v4156_v24, %v256_v23  ;;  %v261_v28 = vrot.slane %v4156_v24, %v260_v25 }
 0x159   :  { %2357 = vmatpush1.bf16.msra.mxu1 %v3533_v30  ;;  %2521 = vmatpush1.bf16.msra.mxu0 %v3536_v31  ;;  %v269_v30 = vrot.slane %v4156_v24, %v268_v26 }
 0x15a   :  { %2358 = vmatprep.subr.bf16.mxu1 %v3541_v32  ;;  %2522 = vmatprep.subr.bf16.mxu0 %v3544_v33 }
 0x15d   :  { %2359 = vmatpush1.bf16.msra.mxu1 %v3539_v34  ;;  %2523 = vmatpush1.bf16.msra.mxu0 %v3542_v29 }
 0x15e   :  { %2360 = vmatprep.subr.bf16.mxu1 %v3547_v35  ;;  %2524 = vmatprep.subr.bf16.mxu0 %v3550_v36 }
 0x161   :  { %2361 = vmatpush1.bf16.msra.mxu1 %v3545_v37  ;;  %2525 = vmatpush1.bf16.msra.mxu0 %v3548_v38 }
 0x162   :  { %2362 = vmatprep.subr.bf16.mxu1 %v3553_v39  ;;  %2526 = vmatprep.subr.bf16.mxu0 %v3556_v40 }
 0x165   :  { %2363 = vmatpush1.bf16.msra.mxu1 %v3551_v41  ;;  %2527 = vmatpush1.bf16.msra.mxu0 %v3554_v42 }
 0x166   :  { %2364 = vmatprep.subr.bf16.mxu1 %v3559_v43  ;;  %2528 = vmatprep.subr.bf16.mxu0 %v3562_v44 }
 0x169   :  { %2365 = vmatpush1.bf16.msra.mxu1 %v3557_v45  ;;  %2529 = vmatpush1.bf16.msra.mxu0 %v3560_v46  ;;  %v3617_v45 = vld [vmem:[#allocation4 + $0x200] ss:$16 sps:$4 sm:$0xff]   ;;  %v3620_v46 = vld [vmem:[#allocation4 + $0x208] ss:$16 sps:$4 sm:$0xff]  }
 0x16a   :  { %2366 = vmatprep.subr.bf16.mxu1 %v3565_v47  ;;  %2530 = vmatprep.subr.bf16.mxu0 %v3568_v48  ;;  %v3625_v48 = vld [vmem:[#allocation4 + $0x224] ss:$16 sps:$4 sm:$0xff]  }
 0x16d   :  { %2367 = vmatpush1.bf16.msra.mxu1 %v3563_v49  ;;  %2531 = vmatpush1.bf16.msra.mxu0 %v3566_v50  ;;  %v3628_v49 = vld [vmem:[#allocation4 + $0x22c] ss:$16 sps:$4 sm:$0xff]  }
 0x16e   :  { %2368 = vmatprep.subr.bf16.mxu1 %v3571_v51  ;;  %2532 = vmatprep.subr.bf16.mxu0 %v3574_v52  ;;  %v3623_v51 = vld [vmem:[#allocation4 + $0x220] ss:$16 sps:$4 sm:$0xff]   ;;  %v3626_v52 = vld [vmem:[#allocation4 + $0x228] ss:$16 sps:$4 sm:$0xff]  }
 0x171   :  { %2369 = vmatpush1.bf16.msra.mxu1 %v3569_v53  ;;  %2533 = vmatpush1.bf16.msra.mxu0 %v3572_v54  ;;  %v3631_v53 = vld [vmem:[#allocation4 + $0x244] ss:$16 sps:$4 sm:$0xff]   ;;  %v3634_v54 = vld [vmem:[#allocation4 + $0x24c] ss:$16 sps:$4 sm:$0xff]  }
 0x172   :  { %2370 = vmatprep.subr.bf16.mxu1 %v3577_v55  ;;  %2534 = vmatprep.subr.bf16.mxu0 %v3580_v56  ;;  %v3629_v55 = vld [vmem:[#allocation4 + $0x240] ss:$16 sps:$4 sm:$0xff]   ;;  %v3632_v56 = vld [vmem:[#allocation4 + $0x248] ss:$16 sps:$4 sm:$0xff]  }
 0x175   :  { %2371 = vmatpush1.bf16.msra.mxu1 %v3575_v57  ;;  %2535 = vmatpush1.bf16.msra.mxu0 %v3578_v58  ;;  %v3637_v57 = vld [vmem:[#allocation4 + $0x264] ss:$16 sps:$4 sm:$0xff]   ;;  %v3640_v58 = vld [vmem:[#allocation4 + $0x26c] ss:$16 sps:$4 sm:$0xff]  }
 0x176   :  { %2372 = vmatprep.subr.bf16.mxu1 %v3583_v59  ;;  %2536 = vmatprep.subr.bf16.mxu0 %v3586_v60  ;;  %v3635_v59 = vld [vmem:[#allocation4 + $0x260] ss:$16 sps:$4 sm:$0xff]   ;;  %v3638_v60 = vld [vmem:[#allocation4 + $0x268] ss:$16 sps:$4 sm:$0xff]  }
 0x179   :  { %2373 = vmatpush1.bf16.msra.mxu1 %v3581_v61  ;;  %2537 = vmatpush1.bf16.msra.mxu0 %v3584_v62  ;;  %v3643_v61 = vld [vmem:[#allocation4 + $0x284] ss:$16 sps:$4 sm:$0xff]   ;;  %v3646_v62 = vld [vmem:[#allocation4 + $0x28c] ss:$16 sps:$4 sm:$0xff]  }
 0x17a   :  { %2374 = vmatprep.subr.bf16.mxu1 %v3589_v63  ;;  %2538 = vmatprep.subr.bf16.mxu0 %v3592_v0  ;;  %v3641_v63 = vld [vmem:[#allocation4 + $0x280] ss:$16 sps:$4 sm:$0xff]   ;;  %v3644_v0 = vld [vmem:[#allocation4 + $0x288] ss:$16 sps:$4 sm:$0xff]  }
 0x17d   :  { %2375 = vmatpush1.bf16.msra.mxu1 %v3587_v1  ;;  %2539 = vmatpush1.bf16.msra.mxu0 %v3590_v2  ;;  %v3649_v1 = vld [vmem:[#allocation4 + $0x2a4] ss:$16 sps:$4 sm:$0xff]   ;;  %v3652_v2 = vld [vmem:[#allocation4 + $0x2ac] ss:$16 sps:$4 sm:$0xff]  }
 0x17e   :  { %2376 = vmatprep.subr.bf16.mxu1 %v3595_v3  ;;  %2540 = vmatprep.subr.bf16.mxu0 %v3598_v4  ;;  %v3647_v3 = vld [vmem:[#allocation4 + $0x2a0] ss:$16 sps:$4 sm:$0xff]   ;;  %v3650_v4 = vld [vmem:[#allocation4 + $0x2a8] ss:$16 sps:$4 sm:$0xff]  }
 0x181   :  { %2377 = vmatpush1.bf16.msra.mxu1 %v3593_v5  ;;  %2541 = vmatpush1.bf16.msra.mxu0 %v3596_v6  ;;  %v3655_v5 = vld [vmem:[#allocation4 + $0x2c4] ss:$16 sps:$4 sm:$0xff]   ;;  %v3658_v6 = vld [vmem:[#allocation4 + $0x2cc] ss:$16 sps:$4 sm:$0xff]  }
 0x182   :  { %2378 = vmatprep.subr.bf16.mxu1 %v3601_v7  ;;  %2542 = vmatprep.subr.bf16.mxu0 %v3604_v8  ;;  %v3653_v7 = vld [vmem:[#allocation4 + $0x2c0] ss:$16 sps:$4 sm:$0xff]   ;;  %v3656_v8 = vld [vmem:[#allocation4 + $0x2c8] ss:$16 sps:$4 sm:$0xff]  }
 0x185   :  { %2379 = vmatpush1.bf16.msra.mxu1 %v3599_v9  ;;  %2543 = vmatpush1.bf16.msra.mxu0 %v3602_v10  ;;  %v3661_v9 = vld [vmem:[#allocation4 + $0x2e4] ss:$16 sps:$4 sm:$0xff]   ;;  %v3664_v10 = vld [vmem:[#allocation4 + $0x2ec] ss:$16 sps:$4 sm:$0xff]  }
 0x186   :  { %2380 = vmatprep.subr.bf16.mxu1 %v3607_v11  ;;  %2544 = vmatprep.subr.bf16.mxu0 %v3610_v12 }
 0x189   :  { %2381 = vmatpush1.bf16.msra.mxu1 %v3605_v13  ;;  %2545 = vmatpush1.bf16.msra.mxu0 %v3608_v14 }
 0x18a   :  { %2382 = vmatprep.subr.bf16.mxu1 %v3613_v15  ;;  %2546 = vmatprep.subr.bf16.mxu0 %v3616_v16 }
 0x18d   :  { %2383 = vmatpush1.bf16.msra.mxu1 %v3611_v17  ;;  %2547 = vmatpush1.bf16.msra.mxu0 %v3614_v18  ;;  %v3659_v17 = vld [vmem:[#allocation4 + $0x2e0] ss:$16 sps:$4 sm:$0xff]   ;;  %v3662_v18 = vld [vmem:[#allocation4 + $0x2e8] ss:$16 sps:$4 sm:$0xff]  }
 0x18e   :  { %2393 = vmatprep.subr.bf16.mxu1 %v3619_v19  ;;  %2557 = vmatprep.subr.bf16.mxu0 %v3622_v20 }
 0x203   :  { %v648_v31 = vpop.f32.mrb[0].mxu1  ;;  %v4169_v32 = vpop.f32.mrb[4].mxu0 }
 0x204   :  { %v649_v33 = vadd.f32 %v648_v31, %v257_v27  ;;  %v650_v34 = vpop.f32.mrb[1].mxu1  ;;  %v691_v29 = vpop.f32.mrb[5].mxu0  ;;  %v3670_v27 = vld [vmem:[#allocation4 + $0x30c] ss:$16 sps:$4 sm:$0xff]   ;;  %v3673_v31 = vld [vmem:[#allocation4 + $0x324] ss:$16 sps:$4 sm:$0xff]  }
 0x205   :  { %v651_v35 = vadd.f32 %v650_v34, %v261_v28  ;;  %v692_v36 = vadd.f32 %v691_v29, %v269_v30  ;;  %v652_v37 = vpop.f32.mrb[2].mxu1  ;;  %v693_v38 = vpop.f32.mrb[6].mxu0  ;;  %v3665_v28 = vld [vmem:[#allocation4 + $0x300] ss:$16 sps:$4 sm:$0xff]   ;;  %v3668_v30 = vld [vmem:[#allocation4 + $0x308] ss:$16 sps:$4 sm:$0xff]  }
 0x206   :  { %v778_v39 = vmax.f32 %v649_v33, 0.0  ;;  %v653_v40 = vpop.f32.mrb[3].mxu1  ;;  %v694_v41 = vpop.f32.mrb[7].mxu0  ;;  %v3676_v33 = vld [vmem:[#allocation4 + $0x32c] ss:$16 sps:$4 sm:$0xff]  }
 0x207   :  { %v779_v42 = vmax.f32 %v651_v35, 0.0  ;;  %v781_v43 = vmax.f32 %v692_v36, 0.0  ;;  %v3671_v34 = vld [vmem:[#allocation4 + $0x320] ss:$16 sps:$4 sm:$0xff]   ;;  %v3674_v29 = vld [vmem:[#allocation4 + $0x328] ss:$16 sps:$4 sm:$0xff]  }
 0x208   :  { %v786_v47 = vpack.c.bf16 %v778_v39, %v778_v39  ;;  %v3679_v35 = vld [vmem:[#allocation4 + $0x344] ss:$16 sps:$4 sm:$0xff]   ;;  %v3682_v36 = vld [vmem:[#allocation4 + $0x34c] ss:$16 sps:$4 sm:$0xff]   ;;  %v3677_v37 = vld [vmem:[#allocation4 + $0x340] ss:$16 sps:$4 sm:$0xff]  }
 0x209   :  { %v787_v44 = vpack.c.bf16 %v779_v42, %v779_v42  ;;  %v789_v50 = vpack.c.bf16 %v781_v43, %v781_v43  ;;  %v3680_v38 = vld [vmem:[#allocation4 + $0x348] ss:$16 sps:$4 sm:$0xff]   ;;  %v3685_v39 = vld [vmem:[#allocation4 + $0x364] ss:$16 sps:$4 sm:$0xff]   ;;  %v3688_v40 = vld [vmem:[#allocation4 + $0x36c] ss:$16 sps:$4 sm:$0xff]  }
 0x20a   :  { %v3683_v41 = vld [vmem:[#allocation4 + $0x360] ss:$16 sps:$4 sm:$0xff]   ;;  %v3686_v42 = vld [vmem:[#allocation4 + $0x368] ss:$16 sps:$4 sm:$0xff]   ;;  %v3691_v43 = vld [vmem:[#allocation4 + $0x384] ss:$16 sps:$4 sm:$0xff]  }
 0x20b   :  { %2384 = vmatprep.mubr.bf16.mxu1 %v787_v44  ;;  %2548 = vmatprep.mubr.bf16.mxu0 %v787_v44  ;;  %v3694_v44 = vld [vmem:[#allocation4 + $0x38c] ss:$16 sps:$4 sm:$0xff]  }
 0x20c   :  { %2385 = vmatmul.mubr.bf16.vlgmr.msra.gmra.mrb[8].mxu1 %v786_v47  ;;  %2549 = vmatmul.mubr.bf16.vlgmr.msra.gmra.mrb[12].mxu0 %v786_v47  ;;  %v264_v47 = vsub.s32 2, %v4150_v22 }
 0x20d   :  { %2394 = vmatpush1.bf16.msra.mxu1 %v3617_v45  ;;  %2558 = vmatpush1.bf16.msra.mxu0 %v3620_v46  ;;  %v3689_v45 = vld [vmem:[#allocation4 + $0x380] ss:$16 sps:$4 sm:$0xff]   ;;  %v3692_v46 = vld [vmem:[#allocation4 + $0x388] ss:$16 sps:$4 sm:$0xff]  }
 0x20e   :  { %2425 = vmatprep.mubr.bf16.mxu1 %v789_v50  ;;  %2589 = vmatprep.mubr.bf16.mxu0 %v789_v50  ;;  %v276_v50 = vsub.s32 5, %v4150_v22 }
 0x20f   :  { %2395 = vmatprep.subr.bf16.mxu1 %v3625_v48  ;;  %2559 = vmatprep.subr.bf16.mxu0 %v3628_v49  ;;  %v3697_v48 = vld [vmem:[#allocation4 + $0x3a4] ss:$16 sps:$4 sm:$0xff]   ;;  %v3700_v49 = vld [vmem:[#allocation4 + $0x3ac] ss:$16 sps:$4 sm:$0xff]  }
 0x211   :  { %2396 = vmatpush1.bf16.msra.mxu1 %v3623_v51  ;;  %2560 = vmatpush1.bf16.msra.mxu0 %v3626_v52  ;;  %v3695_v51 = vld [vmem:[#allocation4 + $0x3a0] ss:$16 sps:$4 sm:$0xff]   ;;  %v3698_v52 = vld [vmem:[#allocation4 + $0x3a8] ss:$16 sps:$4 sm:$0xff]  }
 0x212   :  { %2397 = vmatprep.subr.bf16.mxu1 %v3631_v53  ;;  %2561 = vmatprep.subr.bf16.mxu0 %v3634_v54  ;;  %v265_v53 = vrot.slane %v4156_v24, %v264_v47  ;;  %v3703_v54 = vld [vmem:[#allocation4 + $0x3c4] ss:$16 sps:$4 sm:$0xff]  }
 0x215   :  { %2398 = vmatpush1.bf16.msra.mxu1 %v3629_v55  ;;  %2562 = vmatpush1.bf16.msra.mxu0 %v3632_v56  ;;  %v3706_v55 = vld [vmem:[#allocation4 + $0x3cc] ss:$16 sps:$4 sm:$0xff]   ;;  %v277_v56 = vrot.slane %v4156_v24, %v276_v50  ;;  %v3769_v50 = vld [vmem:[#allocation4 + $0x524] ss:$16 sps:$4 sm:$0xff]  }
 0x216   :  { %2399 = vmatprep.subr.bf16.mxu1 %v3637_v57  ;;  %2563 = vmatprep.subr.bf16.mxu0 %v3640_v58  ;;  %v3701_v57 = vld [vmem:[#allocation4 + $0x3c0] ss:$16 sps:$4 sm:$0xff]   ;;  %v3704_v58 = vld [vmem:[#allocation4 + $0x3c8] ss:$16 sps:$4 sm:$0xff]  }
 0x219   :  { %2400 = vmatpush1.bf16.msra.mxu1 %v3635_v59  ;;  %2564 = vmatpush1.bf16.msra.mxu0 %v3638_v60  ;;  %v690_v59 = vadd.f32 %v4169_v32, %v265_v53  ;;  %v3709_v60 = vld [vmem:[#allocation4 + $0x3e4] ss:$16 sps:$4 sm:$0xff]   ;;  %v3770_v53 = vld [vmem:[#allocation4 + $0x528] ss:$16 sps:$4 sm:$0xff]  }
 0x21a   :  { %2401 = vmatprep.subr.bf16.mxu1 %v3643_v61  ;;  %2565 = vmatprep.subr.bf16.mxu0 %v3646_v62  ;;  %v3712_v61 = vld [vmem:[#allocation4 + $0x3ec] ss:$16 sps:$4 sm:$0xff]  }
 0x21d   :  { %2402 = vmatpush1.bf16.msra.mxu1 %v3641_v63  ;;  %2566 = vmatpush1.bf16.msra.mxu0 %v3644_v0  ;;  %v3707_v63 = vld [vmem:[#allocation4 + $0x3e0] ss:$16 sps:$4 sm:$0xff]   ;;  %v3710_v0 = vld [vmem:[#allocation4 + $0x3e8] ss:$16 sps:$4 sm:$0xff]  }
 0x21e   :  { %2403 = vmatprep.subr.bf16.mxu1 %v3649_v1  ;;  %2567 = vmatprep.subr.bf16.mxu0 %v3652_v2  ;;  %v780_v1 = vmax.f32 %v690_v59, 0.0  ;;  %v3715_v2 = vld [vmem:[#allocation4 + $0x404] ss:$16 sps:$4 sm:$0xff]   ;;  %v3784_v59 = vld [vmem:[#allocation4 + $0x56c] ss:$16 sps:$4 sm:$0xff]  }
 0x220   :  { %v788_v32 = vpack.c.bf16 %v780_v1, %v780_v1  ;;  %v272_v1 = vsub.s32 4, %v4150_v22 }
 0x221   :  { %2404 = vmatpush1.bf16.msra.mxu1 %v3647_v3  ;;  %2568 = vmatpush1.bf16.msra.mxu0 %v3650_v4  ;;  %v3718_v3 = vld [vmem:[#allocation4 + $0x40c] ss:$16 sps:$4 sm:$0xff]  }
 0x222   :  { %2405 = vmatprep.subr.bf16.mxu1 %v3655_v5  ;;  %2569 = vmatprep.subr.bf16.mxu0 %v3658_v6  ;;  %v3713_v5 = vld [vmem:[#allocation4 + $0x400] ss:$16 sps:$4 sm:$0xff]   ;;  %v3716_v6 = vld [vmem:[#allocation4 + $0x408] ss:$16 sps:$4 sm:$0xff]  }
 0x223   :  { %v4171_v11 = vpop.f32.mrb[4].mxu1  ;;  %v4173_v12 = vpop.f32.mrb[8].mxu0 }
 0x224   :  { %v4175_v13 = vpop.f32.mrb[5].mxu1  ;;  %v4177_v14 = vpop.f32.mrb[9].mxu0 }
 0x225   :  { %v734_v15 = vpop.f32.mrb[6].mxu1  ;;  %v775_v16 = vpop.f32.mrb[10].mxu0  ;;  %2406 = vmatpush1.bf16.msra.mxu1 %v3653_v7  ;;  %2570 = vmatpush1.bf16.msra.mxu0 %v3656_v8  ;;  %v733_v62 = vadd.f32 %v4175_v13, %v277_v56  ;;  %v3721_v8 = vld [vmem:[#allocation4 + $0x424] ss:$16 sps:$4 sm:$0xff]   ;;  %v3722_v13 = vld [vmem:[#allocation4 + $0x428] ss:$16 sps:$4 sm:$0xff]  }
 0x226   :  { %v735_v19 = vpop.f32.mrb[7].mxu1  ;;  %v776_v20 = vpop.f32.mrb[11].mxu0  ;;  %2407 = vmatprep.subr.bf16.mxu1 %v3661_v9  ;;  %2571 = vmatprep.subr.bf16.mxu0 %v3664_v10  ;;  %v3724_v9 = vld [vmem:[#allocation4 + $0x42c] ss:$16 sps:$4 sm:$0xff]   ;;  %v3719_v10 = vld [vmem:[#allocation4 + $0x420] ss:$16 sps:$4 sm:$0xff]  }
 0x227   :  { %v783_v4 = vmax.f32 %v733_v62, 0.0  ;;  %v3727_v15 = vld [vmem:[#allocation4 + $0x444] ss:$16 sps:$4 sm:$0xff]   ;;  %v3730_v16 = vld [vmem:[#allocation4 + $0x44c] ss:$16 sps:$4 sm:$0xff]  }
 0x228   :  { %v3733_v19 = vld [vmem:[#allocation4 + $0x464] ss:$16 sps:$4 sm:$0xff]   ;;  %v3736_v20 = vld [vmem:[#allocation4 + $0x46c] ss:$16 sps:$4 sm:$0xff]   ;;  %v3773_v56 = vld [vmem:[#allocation4 + $0x540] ss:$16 sps:$4 sm:$0xff]  }
 0x229   :  { %2408 = vmatpush1.bf16.msra.mxu1 %v3659_v17  ;;  %2572 = vmatpush1.bf16.msra.mxu0 %v3662_v18  ;;  %v791_v7 = vpack.c.bf16 %v783_v4, %v783_v4  ;;  %v3725_v17 = vld [vmem:[#allocation4 + $0x440] ss:$16 sps:$4 sm:$0xff]   ;;  %v3728_v18 = vld [vmem:[#allocation4 + $0x448] ss:$16 sps:$4 sm:$0xff]   ;;  %v3787_v62 = vld [vmem:[#allocation4 + $0x584] ss:$16 sps:$4 sm:$0xff]  }
 0x22a   :  { %2409 = vmatprep.subr.bf16.mxu1 %v3667_v21  ;;  %2573 = vmatprep.subr.bf16.mxu0 %v3670_v27  ;;  %v3731_v21 = vld [vmem:[#allocation4 + $0x460] ss:$16 sps:$4 sm:$0xff]   ;;  %v3734_v27 = vld [vmem:[#allocation4 + $0x468] ss:$16 sps:$4 sm:$0xff]   ;;  %v3796_v4 = vld [vmem:[#allocation4 + $0x5ac] ss:$16 sps:$4 sm:$0xff]  }
 0x22d   :  { %2410 = vmatpush1.bf16.msra.mxu1 %v3665_v28  ;;  %2574 = vmatpush1.bf16.msra.mxu0 %v3668_v30  ;;  %v3739_v28 = vld [vmem:[#allocation4 + $0x484] ss:$16 sps:$4 sm:$0xff]   ;;  %v3742_v30 = vld [vmem:[#allocation4 + $0x48c] ss:$16 sps:$4 sm:$0xff]  }
 0x22e   :  { %2411 = vmatprep.subr.bf16.mxu1 %v3673_v31  ;;  %2575 = vmatprep.subr.bf16.mxu0 %v3676_v33  ;;  %v3737_v31 = vld [vmem:[#allocation4 + $0x480] ss:$16 sps:$4 sm:$0xff]   ;;  %v3740_v33 = vld [vmem:[#allocation4 + $0x488] ss:$16 sps:$4 sm:$0xff]  }
 0x231   :  { %2412 = vmatpush1.bf16.msra.mxu1 %v3671_v34  ;;  %2576 = vmatpush1.bf16.msra.mxu0 %v3674_v29  ;;  %v3745_v34 = vld [vmem:[#allocation4 + $0x4a4] ss:$16 sps:$4 sm:$0xff]   ;;  %v3748_v29 = vld [vmem:[#allocation4 + $0x4ac] ss:$16 sps:$4 sm:$0xff]  }
 0x232   :  { %2413 = vmatprep.subr.bf16.mxu1 %v3679_v35  ;;  %2577 = vmatprep.subr.bf16.mxu0 %v3682_v36  ;;  %v3743_v35 = vld [vmem:[#allocation4 + $0x4a0] ss:$16 sps:$4 sm:$0xff]   ;;  %v3746_v36 = vld [vmem:[#allocation4 + $0x4a8] ss:$16 sps:$4 sm:$0xff]  }
 0x235   :  { %2414 = vmatpush1.bf16.msra.mxu1 %v3677_v37  ;;  %2578 = vmatpush1.bf16.msra.mxu0 %v3680_v38  ;;  %v3751_v37 = vld [vmem:[#allocation4 + $0x4c4] ss:$16 sps:$4 sm:$0xff]   ;;  %v3754_v38 = vld [vmem:[#allocation4 + $0x4cc] ss:$16 sps:$4 sm:$0xff]  }
 0x236   :  { %2415 = vmatprep.subr.bf16.mxu1 %v3685_v39  ;;  %2579 = vmatprep.subr.bf16.mxu0 %v3688_v40  ;;  %v3749_v39 = vld [vmem:[#allocation4 + $0x4c0] ss:$16 sps:$4 sm:$0xff]   ;;  %v3752_v40 = vld [vmem:[#allocation4 + $0x4c8] ss:$16 sps:$4 sm:$0xff]  }
 0x239   :  { %2416 = vmatpush1.bf16.msra.mxu1 %v3683_v41  ;;  %2580 = vmatpush1.bf16.msra.mxu0 %v3686_v42  ;;  %v3757_v41 = vld [vmem:[#allocation4 + $0x4e4] ss:$16 sps:$4 sm:$0xff]   ;;  %v3760_v42 = vld [vmem:[#allocation4 + $0x4ec] ss:$16 sps:$4 sm:$0xff]  }
 0x23a   :  { %2417 = vmatprep.subr.bf16.mxu1 %v3691_v43  ;;  %2581 = vmatprep.subr.bf16.mxu0 %v3694_v44  ;;  %v3755_v43 = vld [vmem:[#allocation4 + $0x4e0] ss:$16 sps:$4 sm:$0xff]   ;;  %v3758_v44 = vld [vmem:[#allocation4 + $0x4e8] ss:$16 sps:$4 sm:$0xff]  }
 0x23d   :  { %2418 = vmatpush1.bf16.msra.mxu1 %v3689_v45  ;;  %2582 = vmatpush1.bf16.msra.mxu0 %v3692_v46  ;;  %v3763_v45 = vld [vmem:[#allocation4 + $0x504] ss:$16 sps:$4 sm:$0xff]   ;;  %v3766_v46 = vld [vmem:[#allocation4 + $0x50c] ss:$16 sps:$4 sm:$0xff]  }
 0x23e   :  { %2419 = vmatprep.subr.bf16.mxu1 %v3697_v48  ;;  %2583 = vmatprep.subr.bf16.mxu0 %v3700_v49  ;;  %v3761_v48 = vld [vmem:[#allocation4 + $0x500] ss:$16 sps:$4 sm:$0xff]   ;;  %v3764_v49 = vld [vmem:[#allocation4 + $0x508] ss:$16 sps:$4 sm:$0xff]  }
 0x241   :  { %2420 = vmatpush1.bf16.msra.mxu1 %v3695_v51  ;;  %2584 = vmatpush1.bf16.msra.mxu0 %v3698_v52  ;;  %v3772_v51 = vld [vmem:[#allocation4 + $0x52c] ss:$16 sps:$4 sm:$0xff]   ;;  %v3767_v52 = vld [vmem:[#allocation4 + $0x520] ss:$16 sps:$4 sm:$0xff]  }
 0x242   :  { %2421 = vmatprep.subr.bf16.mxu1 %v3703_v54  ;;  %2585 = vmatprep.subr.bf16.mxu0 %v3706_v55  ;;  %v3775_v54 = vld [vmem:[#allocation4 + $0x544] ss:$16 sps:$4 sm:$0xff]   ;;  %v3778_v55 = vld [vmem:[#allocation4 + $0x54c] ss:$16 sps:$4 sm:$0xff]  }
 0x245   :  { %2422 = vmatpush1.bf16.msra.mxu1 %v3701_v57  ;;  %2586 = vmatpush1.bf16.msra.mxu0 %v3704_v58  ;;  %v3776_v57 = vld [vmem:[#allocation4 + $0x548] ss:$16 sps:$4 sm:$0xff]   ;;  %v3781_v58 = vld [vmem:[#allocation4 + $0x564] ss:$16 sps:$4 sm:$0xff]  }
 0x246   :  { %2423 = vmatprep.subr.bf16.mxu1 %v3709_v60  ;;  %2587 = vmatprep.subr.bf16.mxu0 %v3712_v61  ;;  %v3779_v60 = vld [vmem:[#allocation4 + $0x560] ss:$16 sps:$4 sm:$0xff]   ;;  %v3782_v61 = vld [vmem:[#allocation4 + $0x568] ss:$16 sps:$4 sm:$0xff]  }
 0x249   :  { %2424 = vmatpush1.bf16.msra.mxu1 %v3707_v63  ;;  %2588 = vmatpush1.bf16.msra.mxu0 %v3710_v0  ;;  %v3790_v63 = vld [vmem:[#allocation4 + $0x58c] ss:$16 sps:$4 sm:$0xff]   ;;  %v3785_v0 = vld [vmem:[#allocation4 + $0x580] ss:$16 sps:$4 sm:$0xff]  }
 0x24a   :  { %2434 = vmatprep.subr.bf16.mxu1 %v3715_v2  ;;  %2598 = vmatprep.subr.bf16.mxu0 %v3718_v3  ;;  %v3788_v2 = vld [vmem:[#allocation4 + $0x588] ss:$16 sps:$4 sm:$0xff]   ;;  %v3793_v3 = vld [vmem:[#allocation4 + $0x5a4] ss:$16 sps:$4 sm:$0xff]  }
 0x24c   :  { %2426 = vmatmul.mubr.bf16.vlgmr.msra.gmra.mrb[8].mxu1 %v788_v32  ;;  %2590 = vmatmul.mubr.bf16.vlgmr.msra.gmra.mrb[12].mxu0 %v788_v32  ;;  %v3791_v32 = vld [vmem:[#allocation4 + $0x5a0] ss:$16 sps:$4 sm:$0xff]  }
 0x24d   :  { %2435 = vmatpush1.bf16.msra.mxu1 %v3713_v5  ;;  %2466 = vmatprep.mubr.bf16.mxu1 %v791_v7  ;;  %v284_v5 = vsub.s32 7, %v4150_v22 }
 0x24e   :  { %2599 = vmatpush1.bf16.msra.mxu0 %v3716_v6  ;;  %2630 = vmatprep.mubr.bf16.mxu0 %v791_v7  ;;  %v273_v6 = vrot.slane %v4156_v24, %v272_v1  ;;  %v3794_v7 = vld [vmem:[#allocation4 + $0x5a8] ss:$16 sps:$4 sm:$0xff]   ;;  %v3857_v1 = vld [vmem:[#allocation4 + $0x700] ss:$16 sps:$4 sm:$0xff]  }
 0x24f   :  { %2436 = vmatprep.subr.bf16.mxu1 %v3721_v8  ;;  %2600 = vmatprep.subr.bf16.mxu0 %v3724_v9  ;;  %v3799_v8 = vld [vmem:[#allocation4 + $0x5c4] ss:$16 sps:$4 sm:$0xff]   ;;  %v3802_v9 = vld [vmem:[#allocation4 + $0x5cc] ss:$16 sps:$4 sm:$0xff]  }
 0x251   :  { %2437 = vmatpush1.bf16.msra.mxu1 %v3719_v10  ;;  %v285_v10 = vrot.slane %v4156_v24, %v284_v5  ;;  %v3863_v5 = vld [vmem:[#allocation4 + $0x720] ss:$16 sps:$4 sm:$0xff]  }
 0x252   :  { %2601 = vmatpush1.bf16.msra.mxu0 %v3722_v13  ;;  %2438 = vmatprep.subr.bf16.mxu1 %v3727_v15  ;;  %v3797_v13 = vld [vmem:[#allocation4 + $0x5c0] ss:$16 sps:$4 sm:$0xff]   ;;  %v731_v15 = vadd.f32 %v4171_v11, %v273_v6  ;;  %v3871_v6 = vld [vmem:[#allocation4 + $0x744] ss:$16 sps:$4 sm:$0xff]  }
 0x253   :  { %2602 = vmatprep.subr.bf16.mxu0 %v3730_v16  ;;  %v3800_v16 = vld [vmem:[#allocation4 + $0x5c8] ss:$16 sps:$4 sm:$0xff]   ;;  %v3809_v11 = vld [vmem:[#allocation4 + $0x600] ss:$16 sps:$4 sm:$0xff]  }
 0x255   :  { %2439 = vmatpush1.bf16.msra.mxu1 %v3725_v17  ;;  %v3805_v17 = vld [vmem:[#allocation4 + $0x5e4] ss:$16 sps:$4 sm:$0xff]  }
 0x256   :  { %2603 = vmatpush1.bf16.msra.mxu0 %v3728_v18  ;;  %2440 = vmatprep.subr.bf16.mxu1 %v3733_v19  ;;  %v3808_v18 = vld [vmem:[#allocation4 + $0x5ec] ss:$16 sps:$4 sm:$0xff]   ;;  %v774_v19 = vadd.f32 %v4177_v14, %v285_v10  ;;  %v3877_v10 = vld [vmem:[#allocation4 + $0x764] ss:$16 sps:$4 sm:$0xff]  }
 0x257   :  { %2604 = vmatprep.subr.bf16.mxu0 %v3736_v20  ;;  %v3803_v20 = vld [vmem:[#allocation4 + $0x5e0] ss:$16 sps:$4 sm:$0xff]   ;;  %v3820_v14 = vld [vmem:[#allocation4 + $0x62c] ss:$16 sps:$4 sm:$0xff]  }
 0x259   :  { %2441 = vmatpush1.bf16.msra.mxu1 %v3731_v21  ;;  %v782_v21 = vmax.f32 %v731_v15, 0.0  ;;  %v3875_v15 = vld [vmem:[#allocation4 + $0x760] ss:$16 sps:$4 sm:$0xff]  }
 0x25a   :  { %2605 = vmatpush1.bf16.msra.mxu0 %v3734_v27  ;;  %2442 = vmatprep.subr.bf16.mxu1 %v3739_v28  ;;  %v3806_v27 = vld [vmem:[#allocation4 + $0x5e8] ss:$16 sps:$4 sm:$0xff]   ;;  %v3811_v28 = vld [vmem:[#allocation4 + $0x604] ss:$16 sps:$4 sm:$0xff]  }
 0x25b   :  { %2606 = vmatprep.subr.bf16.mxu0 %v3742_v30  ;;  %v3814_v30 = vld [vmem:[#allocation4 + $0x60c] ss:$16 sps:$4 sm:$0xff]  }
 0x25d   :  { %2443 = vmatpush1.bf16.msra.mxu1 %v3737_v31  ;;  %v785_v31 = vmax.f32 %v774_v19, 0.0  ;;  %v3881_v19 = vld [vmem:[#allocation4 + $0x780] ss:$16 sps:$4 sm:$0xff]  }
 0x25e   :  { %2607 = vmatpush1.bf16.msra.mxu0 %v3740_v33  ;;  %2444 = vmatprep.subr.bf16.mxu1 %v3745_v34  ;;  %v790_v33 = vpack.c.bf16 %v782_v21, %v782_v21  ;;  %v3812_v34 = vld [vmem:[#allocation4 + $0x608] ss:$16 sps:$4 sm:$0xff]  }
 0x25f   :  { %2608 = vmatprep.subr.bf16.mxu0 %v3748_v29  ;;  %v3817_v29 = vld [vmem:[#allocation4 + $0x624] ss:$16 sps:$4 sm:$0xff]   ;;  %v3884_v21 = vld [vmem:[#allocation4 + $0x788] ss:$16 sps:$4 sm:$0xff]  }
 0x261   :  { %2445 = vmatpush1.bf16.msra.mxu1 %v3743_v35  ;;  %v793_v35 = vpack.c.bf16 %v785_v31, %v785_v31 }
 0x262   :  { %2609 = vmatpush1.bf16.msra.mxu0 %v3746_v36  ;;  %2446 = vmatprep.subr.bf16.mxu1 %v3751_v37  ;;  %v3815_v36 = vld [vmem:[#allocation4 + $0x620] ss:$16 sps:$4 sm:$0xff]   ;;  %v3818_v37 = vld [vmem:[#allocation4 + $0x628] ss:$16 sps:$4 sm:$0xff]  }
 0x263   :  { %2610 = vmatprep.subr.bf16.mxu0 %v3754_v38  ;;  %v3823_v38 = vld [vmem:[#allocation4 + $0x644] ss:$16 sps:$4 sm:$0xff]  }
 0x265   :  { %2447 = vmatpush1.bf16.msra.mxu1 %v3749_v39  ;;  %v3826_v39 = vld [vmem:[#allocation4 + $0x64c] ss:$16 sps:$4 sm:$0xff]  }
 0x266   :  { %2611 = vmatpush1.bf16.msra.mxu0 %v3752_v40  ;;  %2448 = vmatprep.subr.bf16.mxu1 %v3757_v41  ;;  %v3821_v40 = vld [vmem:[#allocation4 + $0x640] ss:$16 sps:$4 sm:$0xff]   ;;  %v3824_v41 = vld [vmem:[#allocation4 + $0x648] ss:$16 sps:$4 sm:$0xff]  }
 0x267   :  { %2612 = vmatprep.subr.bf16.mxu0 %v3760_v42  ;;  %v3829_v42 = vld [vmem:[#allocation4 + $0x664] ss:$16 sps:$4 sm:$0xff]  }
 0x269   :  { %2449 = vmatpush1.bf16.msra.mxu1 %v3755_v43  ;;  %v3832_v43 = vld [vmem:[#allocation4 + $0x66c] ss:$16 sps:$4 sm:$0xff]  }
 0x26a   :  { %2613 = vmatpush1.bf16.msra.mxu0 %v3758_v44  ;;  %2450 = vmatprep.subr.bf16.mxu1 %v3763_v45  ;;  %v3827_v44 = vld [vmem:[#allocation4 + $0x660] ss:$16 sps:$4 sm:$0xff]   ;;  %v3830_v45 = vld [vmem:[#allocation4 + $0x668] ss:$16 sps:$4 sm:$0xff]  }
 0x26b   :  { %2614 = vmatprep.subr.bf16.mxu0 %v3766_v46  ;;  %v3835_v46 = vld [vmem:[#allocation4 + $0x684] ss:$16 sps:$4 sm:$0xff]  }
 0x26d   :  { %2451 = vmatpush1.bf16.msra.mxu1 %v3761_v48  ;;  %v3838_v48 = vld [vmem:[#allocation4 + $0x68c] ss:$16 sps:$4 sm:$0xff]  }
 0x26e   :  { %2615 = vmatpush1.bf16.msra.mxu0 %v3764_v49  ;;  %2452 = vmatprep.subr.bf16.mxu1 %v3769_v50  ;;  %v3833_v49 = vld [vmem:[#allocation4 + $0x680] ss:$16 sps:$4 sm:$0xff]   ;;  %v3836_v50 = vld [vmem:[#allocation4 + $0x688] ss:$16 sps:$4 sm:$0xff]  }
 0x26f   :  { %2616 = vmatprep.subr.bf16.mxu0 %v3772_v51  ;;  %v3841_v51 = vld [vmem:[#allocation4 + $0x6a4] ss:$16 sps:$4 sm:$0xff]  }
 0x271   :  { %2453 = vmatpush1.bf16.msra.mxu1 %v3767_v52  ;;  %v3844_v52 = vld [vmem:[#allocation4 + $0x6ac] ss:$16 sps:$4 sm:$0xff]  }
 0x272   :  { %2617 = vmatpush1.bf16.msra.mxu0 %v3770_v53  ;;  %2454 = vmatprep.subr.bf16.mxu1 %v3775_v54  ;;  %v3839_v53 = vld [vmem:[#allocation4 + $0x6a0] ss:$16 sps:$4 sm:$0xff]   ;;  %v3842_v54 = vld [vmem:[#allocation4 + $0x6a8] ss:$16 sps:$4 sm:$0xff]  }
 0x273   :  { %2618 = vmatprep.subr.bf16.mxu0 %v3778_v55  ;;  %v3847_v55 = vld [vmem:[#allocation4 + $0x6c4] ss:$16 sps:$4 sm:$0xff]  }
 0x275   :  { %2455 = vmatpush1.bf16.msra.mxu1 %v3773_v56  ;;  %v3850_v56 = vld [vmem:[#allocation4 + $0x6cc] ss:$16 sps:$4 sm:$0xff]  }
 0x276   :  { %2619 = vmatpush1.bf16.msra.mxu0 %v3776_v57  ;;  %2456 = vmatprep.subr.bf16.mxu1 %v3781_v58  ;;  %v3845_v57 = vld [vmem:[#allocation4 + $0x6c0] ss:$16 sps:$4 sm:$0xff]   ;;  %v3848_v58 = vld [vmem:[#allocation4 + $0x6c8] ss:$16 sps:$4 sm:$0xff]  }
 0x277   :  { %2620 = vmatprep.subr.bf16.mxu0 %v3784_v59  ;;  %v3853_v59 = vld [vmem:[#allocation4 + $0x6e4] ss:$16 sps:$4 sm:$0xff]  }
 0x279   :  { %2457 = vmatpush1.bf16.msra.mxu1 %v3779_v60  ;;  %v3856_v60 = vld [vmem:[#allocation4 + $0x6ec] ss:$16 sps:$4 sm:$0xff]  }
 0x27a   :  { %2621 = vmatpush1.bf16.msra.mxu0 %v3782_v61  ;;  %2458 = vmatprep.subr.bf16.mxu1 %v3787_v62  ;;  %v3851_v61 = vld [vmem:[#allocation4 + $0x6e0] ss:$16 sps:$4 sm:$0xff]   ;;  %v3854_v62 = vld [vmem:[#allocation4 + $0x6e8] ss:$16 sps:$4 sm:$0xff]  }
 0x27b   :  { %2622 = vmatprep.subr.bf16.mxu0 %v3790_v63  ;;  %v3859_v63 = vld [vmem:[#allocation4 + $0x704] ss:$16 sps:$4 sm:$0xff]  }
 0x27d   :  { %2459 = vmatpush1.bf16.msra.mxu1 %v3785_v0  ;;  %v3862_v0 = vld [vmem:[#allocation4 + $0x70c] ss:$16 sps:$4 sm:$0xff]  }
 0x27e   :  { %2623 = vmatpush1.bf16.msra.mxu0 %v3788_v2  ;;  %2460 = vmatprep.subr.bf16.mxu1 %v3793_v3  ;;  %v3860_v2 = vld [vmem:[#allocation4 + $0x708] ss:$16 sps:$4 sm:$0xff]   ;;  %v3865_v3 = vld [vmem:[#allocation4 + $0x724] ss:$16 sps:$4 sm:$0xff]  }
 0x27f   :  { %2624 = vmatprep.subr.bf16.mxu0 %v3796_v4  ;;  %v3868_v4 = vld [vmem:[#allocation4 + $0x72c] ss:$16 sps:$4 sm:$0xff]  }
 0x281   :  { %2461 = vmatpush1.bf16.msra.mxu1 %v3791_v32  ;;  %v3866_v32 = vld [vmem:[#allocation4 + $0x728] ss:$16 sps:$4 sm:$0xff]  }
 0x282   :  { %2625 = vmatpush1.bf16.msra.mxu0 %v3794_v7  ;;  %2462 = vmatprep.subr.bf16.mxu1 %v3799_v8  ;;  %v3874_v7 = vld [vmem:[#allocation4 + $0x74c] ss:$16 sps:$4 sm:$0xff]   ;;  %v3869_v8 = vld [vmem:[#allocation4 + $0x740] ss:$16 sps:$4 sm:$0xff]  }
 0x283   :  { %2626 = vmatprep.subr.bf16.mxu0 %v3802_v9  ;;  %v3872_v9 = vld [vmem:[#allocation4 + $0x748] ss:$16 sps:$4 sm:$0xff]  }
 0x285   :  { %2463 = vmatpush1.bf16.msra.mxu1 %v3797_v13  ;;  %v3880_v13 = vld [vmem:[#allocation4 + $0x76c] ss:$16 sps:$4 sm:$0xff]  }
 0x286   :  { %2627 = vmatpush1.bf16.msra.mxu0 %v3800_v16  ;;  %2464 = vmatprep.subr.bf16.mxu1 %v3805_v17  ;;  %v3878_v16 = vld [vmem:[#allocation4 + $0x768] ss:$16 sps:$4 sm:$0xff]   ;;  %v3883_v17 = vld [vmem:[#allocation4 + $0x784] ss:$16 sps:$4 sm:$0xff]  }
 0x287   :  { %2628 = vmatprep.subr.bf16.mxu0 %v3808_v18  ;;  %v3886_v18 = vld [vmem:[#allocation4 + $0x78c] ss:$16 sps:$4 sm:$0xff]  }
 0x289   :  { %2465 = vmatpush1.bf16.msra.mxu1 %v3803_v20  ;;  %v280_v20 = vsub.s32 6, %v4150_v22 }
 0x28a   :  { %2629 = vmatpush1.bf16.msra.mxu0 %v3806_v27  ;;  %2475 = vmatprep.subr.bf16.mxu1 %v3811_v28  ;;  %v3889_v27 = vld [vmem:[#allocation4 + $0x7a4] ss:$16 sps:$4 sm:$0xff]   ;;  %v3892_v28 = vld [vmem:[#allocation4 + $0x7ac] ss:$16 sps:$4 sm:$0xff]  }
 0x28b   :  { %2639 = vmatprep.subr.bf16.mxu0 %v3814_v30  ;;  %v3887_v30 = vld [vmem:[#allocation4 + $0x7a0] ss:$16 sps:$4 sm:$0xff]   ;;  %v281_v31 = vrot.slane %v4156_v24, %v280_v20  ;;  %v3902_v24 = vld [vmem:[#allocation4 + $0x7e8] ss:$16 sps:$4 sm:$0xff]  }
 0x28c   :  { %2467 = vmatmul.mubr.bf16.vlgmr.msra.gmra.mrb[8].mxu1 %v790_v33 }
 0x28d   :  { %2631 = vmatmul.mubr.bf16.vlgmr.msra.gmra.mrb[12].mxu0 %v790_v33  ;;  %2476 = vmatpush1.bf16.msra.mxu1 %v3809_v11  ;;  %v3890_v11 = vld [vmem:[#allocation4 + $0x7a8] ss:$16 sps:$4 sm:$0xff]   ;;  %v3895_v33 = vld [vmem:[#allocation4 + $0x7c4] ss:$16 sps:$4 sm:$0xff]  }
 0x28e   :  { %2507 = vmatprep.mubr.bf16.mxu1 %v793_v35  ;;  %2640 = vmatpush1.bf16.msra.mxu0 %v3812_v34  ;;  %v3898_v34 = vld [vmem:[#allocation4 + $0x7cc] ss:$16 sps:$4 sm:$0xff]  }
 0x28f   :  { %2671 = vmatprep.mubr.bf16.mxu0 %v793_v35  ;;  %2477 = vmatprep.subr.bf16.mxu1 %v3817_v29  ;;  %v3893_v29 = vld [vmem:[#allocation4 + $0x7c0] ss:$16 sps:$4 sm:$0xff]   ;;  %v772_v35 = vadd.f32 %v4173_v12, %v281_v31 }
 0x290   :  { %2641 = vmatprep.subr.bf16.mxu0 %v3820_v14  ;;  %v3896_v14 = vld [vmem:[#allocation4 + $0x7c8] ss:$16 sps:$4 sm:$0xff]   ;;  %v3908_v12 = vld [vmem:[#allocation6 + $0x80] sm:$0xff]  }
 0x291   :  { %2478 = vmatpush1.bf16.msra.mxu1 %v3815_v36  ;;  %v3901_v36 = vld [vmem:[#allocation4 + $0x7e4] ss:$16 sps:$4 sm:$0xff]  }
 0x292   :  { %2642 = vmatpush1.bf16.msra.mxu0 %v3818_v37  ;;  %2479 = vmatprep.subr.bf16.mxu1 %v3823_v38  ;;  %v3904_v37 = vld [vmem:[#allocation4 + $0x7ec] ss:$16 sps:$4 sm:$0xff]   ;;  %v3899_v38 = vld [vmem:[#allocation4 + $0x7e0] ss:$16 sps:$4 sm:$0xff]  }
 0x293   :  { %2643 = vmatprep.subr.bf16.mxu0 %v3826_v39  ;;  %v784_v39 = vmax.f32 %v772_v35, 0.0 }
 0x295   :  { %2480 = vmatpush1.bf16.msra.mxu1 %v3821_v40  ;;  %v3905_v40 = vld [vmem:[#allocation6 + $0x40] sm:$0xff]  }
 0x296   :  { %2644 = vmatpush1.bf16.msra.mxu0 %v3824_v41  ;;  %2481 = vmatprep.subr.bf16.mxu1 %v3829_v42  ;;  %v3906_v41 = vld [vmem:[#allocation6 + $0xc0] sm:$0xff]  }
 0x297   :  { %2645 = vmatprep.subr.bf16.mxu0 %v3832_v43  ;;  %v3907_v42 = vld [vmem:[#allocation6] sm:$0xff]   ;;  %v792_v43 = vpack.c.bf16 %v784_v39, %v784_v39 }
 0x299   :  { %2482 = vmatpush1.bf16.msra.mxu1 %v3827_v44  ;;  %v3909_v44 = vld [vmem:[#allocation6 + $0x48] sm:$0xff]  }
 0x29a   :  { %2646 = vmatpush1.bf16.msra.mxu0 %v3830_v45  ;;  %2483 = vmatprep.subr.bf16.mxu1 %v3835_v46  ;;  %v3910_v45 = vld [vmem:[#allocation6 + $0xc8] sm:$0xff]  }
 0x29b   :  { %2647 = vmatprep.subr.bf16.mxu0 %v3838_v48  ;;  %v3911_v46 = vld [vmem:[#allocation6 + $0x8] sm:$0xff]  }
 0x29c   :  { %v3912_v48 = vld [vmem:[#allocation6 + $0x88] sm:$0xff]  }
 0x29d   :  { %2484 = vmatpush1.bf16.msra.mxu1 %v3833_v49  ;;  %v3913_v49 = vld [vmem:[#allocation6 + $0x50] sm:$0xff]  }
 0x29e   :  { %2648 = vmatpush1.bf16.msra.mxu0 %v3836_v50  ;;  %2485 = vmatprep.subr.bf16.mxu1 %v3841_v51  ;;  %v3914_v50 = vld [vmem:[#allocation6 + $0xd0] sm:$0xff]  }
 0x29f   :  { %2649 = vmatprep.subr.bf16.mxu0 %v3844_v52  ;;  %v3915_v51 = vld [vmem:[#allocation6 + $0x10] sm:$0xff]  }
 0x2a0   :  { %v3916_v52 = vld [vmem:[#allocation6 + $0x90] sm:$0xff]  }
 0x2a1   :  { %2486 = vmatpush1.bf16.msra.mxu1 %v3839_v53  ;;  %v3917_v53 = vld [vmem:[#allocation6 + $0x58] sm:$0xff]  }
 0x2a2   :  { %2650 = vmatpush1.bf16.msra.mxu0 %v3842_v54  ;;  %2487 = vmatprep.subr.bf16.mxu1 %v3847_v55  ;;  %v3918_v54 = vld [vmem:[#allocation6 + $0xd8] sm:$0xff]  }
 0x2a3   :  { %2651 = vmatprep.subr.bf16.mxu0 %v3850_v56  ;;  %v3919_v55 = vld [vmem:[#allocation6 + $0x18] sm:$0xff]  }
 0x2a4   :  { %v3920_v56 = vld [vmem:[#allocation6 + $0x98] sm:$0xff]  }
 0x2a5   :  { %2488 = vmatpush1.bf16.msra.mxu1 %v3845_v57  ;;  %v3921_v57 = vld [vmem:[#allocation6 + $0x60] sm:$0xff]  }
 0x2a6   :  { %2652 = vmatpush1.bf16.msra.mxu0 %v3848_v58  ;;  %2489 = vmatprep.subr.bf16.mxu1 %v3853_v59  ;;  %v3922_v58 = vld [vmem:[#allocation6 + $0xe0] sm:$0xff]  }
 0x2a7   :  { %2653 = vmatprep.subr.bf16.mxu0 %v3856_v60  ;;  %v3923_v59 = vld [vmem:[#allocation6 + $0x20] sm:$0xff]  }
 0x2a8   :  { %v3924_v60 = vld [vmem:[#allocation6 + $0xa0] sm:$0xff]  }
 0x2a9   :  { %2490 = vmatpush1.bf16.msra.mxu1 %v3851_v61  ;;  %v3925_v61 = vld [vmem:[#allocation6 + $0x68] sm:$0xff]  }
 0x2aa   :  { %2654 = vmatpush1.bf16.msra.mxu0 %v3854_v62  ;;  %2491 = vmatprep.subr.bf16.mxu1 %v3859_v63  ;;  %v3926_v62 = vld [vmem:[#allocation6 + $0xe8] sm:$0xff]  }
 0x2ab   :  { %2655 = vmatprep.subr.bf16.mxu0 %v3862_v0  ;;  %v3927_v63 = vld [vmem:[#allocation6 + $0x28] sm:$0xff]  }
 0x2ac   :  { %v3928_v0 = vld [vmem:[#allocation6 + $0xa8] sm:$0xff]  }
 0x2ad   :  { %2492 = vmatpush1.bf16.msra.mxu1 %v3857_v1  ;;  %v3929_v1 = vld [vmem:[#allocation6 + $0x70] sm:$0xff]  }
 0x2ae   :  { %2656 = vmatpush1.bf16.msra.mxu0 %v3860_v2  ;;  %2493 = vmatprep.subr.bf16.mxu1 %v3865_v3  ;;  %v3930_v2 = vld [vmem:[#allocation6 + $0xf0] sm:$0xff]  }
 0x2af   :  { %2657 = vmatprep.subr.bf16.mxu0 %v3868_v4  ;;  %v3931_v3 = vld [vmem:[#allocation6 + $0x30] sm:$0xff]  }
 0x2b0   :  { %v3932_v4 = vld [vmem:[#allocation6 + $0xb0] sm:$0xff]  }
 0x2b1   :  { %2494 = vmatpush1.bf16.msra.mxu1 %v3863_v5  ;;  %v3933_v5 = vld [vmem:[#allocation6 + $0x78] sm:$0xff]  }
 0x2b2   :  { %2658 = vmatpush1.bf16.msra.mxu0 %v3866_v32  ;;  %2495 = vmatprep.subr.bf16.mxu1 %v3871_v6  ;;  %v3934_v32 = vld [vmem:[#allocation6 + $0xf8] sm:$0xff]  }
 0x2b3   :  { %2659 = vmatprep.subr.bf16.mxu0 %v3874_v7  ;;  %v3935_v6 = vld [vmem:[#allocation6 + $0x38] sm:$0xff]  }
 0x2b4   :  { %v3936_v7 = vld [vmem:[#allocation6 + $0xb8] sm:$0xff]  }
 0x2b5   :  { %2496 = vmatpush1.bf16.msra.mxu1 %v3869_v8  ;;  %v1050_v8 = vld [vmem:[%s4219_s6] sm:$0xf] }
 0x2b6   :  { %2660 = vmatpush1.bf16.msra.mxu0 %v3872_v9  ;;  %2497 = vmatprep.subr.bf16.mxu1 %v3877_v10  ;;  %v1055_v9 = vrot.slane %v1050_v8, %v256_v23  ;;  %v1063_v10 = vrot.slane %v1050_v8, %v264_v47 }
 0x2b7   :  { %2661 = vmatprep.subr.bf16.mxu0 %v3880_v13  ;;  %v1059_v13 = vrot.slane %v1050_v8, %v260_v25 }
 0x2b9   :  { %2498 = vmatpush1.bf16.msra.mxu1 %v3875_v15  ;;  %v1067_v15 = vrot.slane %v1050_v8, %v268_v26 }
 0x2ba   :  { %2662 = vmatpush1.bf16.msra.mxu0 %v3878_v16  ;;  %2499 = vmatprep.subr.bf16.mxu1 %v3883_v17 }
 0x2bb   :  { %2663 = vmatprep.subr.bf16.mxu0 %v3886_v18 }
 0x2bd   :  { %2500 = vmatpush1.bf16.msra.mxu1 %v3881_v19 }
 0x2be   :  { %2664 = vmatpush1.bf16.msra.mxu0 %v3884_v21  ;;  %2501 = vmatprep.subr.bf16.mxu1 %v3889_v27 }
 0x2bf   :  { %2665 = vmatprep.subr.bf16.mxu0 %v3892_v28 }
 0x2c1   :  { %2502 = vmatpush1.bf16.msra.mxu1 %v3887_v30 }
 0x2c2   :  { %2666 = vmatpush1.bf16.msra.mxu0 %v3890_v11  ;;  %2503 = vmatprep.subr.bf16.mxu1 %v3895_v33 }
 0x2c3   :  { %2667 = vmatprep.subr.bf16.mxu0 %v3898_v34 }
 0x2c5   :  { %2504 = vmatpush1.bf16.msra.mxu1 %v3893_v29 }
 0x2c6   :  { %2668 = vmatpush1.bf16.msra.mxu0 %v3896_v14  ;;  %2505 = vmatprep.subr.bf16.mxu1 %v3901_v36 }
 0x2c7   :  { %2669 = vmatprep.subr.bf16.mxu0 %v3904_v37  ;;  %v3367_v37 = vld [vmem:[%s4221_s8] ss:$0 sm:$0xff] }
 0x2c9   :  { %2506 = vmatpush1.bf16.msra.mxu1 %v3899_v38 }
 0x2ca   :  { %2670 = vmatpush1.bf16.msra.mxu0 %v3902_v24  ;;  %3409 = vmatprep.subr.bf16.mxu1 %v3905_v40 }
 0x2cb   :  { %3431 = vmatprep.subr.bf16.mxu0 %v3906_v41 }
 0x2cc   :  { %2508 = vmatmul.mubr.bf16.vlgmr.msra.gmra.mrb[8].mxu1 %v792_v43 }
 0x2cd   :  { %2672 = vmatmul.mubr.bf16.vlgmr.msra.gmra.mrb[12].mxu0 %v792_v43  ;;  %3410 = vmatpush3.bf16.msra.mxu1 %v3907_v42 }
 0x2ce   :  { %3432 = vmatpush3.bf16.msra.mxu0 %v3908_v12  ;;  %3411 = vmatprep.subr.bf16.mxu1 %v3909_v44 }
 0x2cf   :  { %3433 = vmatprep.subr.bf16.mxu0 %v3910_v45 }
 0x2d1   :  { %3412 = vmatpush3.bf16.msra.mxu1 %v3911_v46 }
 0x2d2   :  { %3434 = vmatpush3.bf16.msra.mxu0 %v3912_v48  ;;  %3413 = vmatprep.subr.bf16.mxu1 %v3913_v49 }
 0x2d3   :  { %3435 = vmatprep.subr.bf16.mxu0 %v3914_v50 }
 0x2d5   :  { %3414 = vmatpush3.bf16.msra.mxu1 %v3915_v51 }
 0x2d6   :  { %3436 = vmatpush3.bf16.msra.mxu0 %v3916_v52  ;;  %3415 = vmatprep.subr.bf16.mxu1 %v3917_v53 }
 0x2d7   :  { %3437 = vmatprep.subr.bf16.mxu0 %v3918_v54 }
 0x2d9   :  { %3416 = vmatpush3.bf16.msra.mxu1 %v3919_v55 }
 0x2da   :  { %3438 = vmatpush3.bf16.msra.mxu0 %v3920_v56  ;;  %3417 = vmatprep.subr.bf16.mxu1 %v3921_v57 }
 0x2db   :  { %3439 = vmatprep.subr.bf16.mxu0 %v3922_v58 }
 0x2dd   :  { %3418 = vmatpush3.bf16.msra.mxu1 %v3923_v59 }
 0x2de   :  { %3440 = vmatpush3.bf16.msra.mxu0 %v3924_v60  ;;  %3419 = vmatprep.subr.bf16.mxu1 %v3925_v61 }
 0x2df   :  { %3441 = vmatprep.subr.bf16.mxu0 %v3926_v62 }
 0x2e1   :  { %3420 = vmatpush3.bf16.msra.mxu1 %v3927_v63 }
 0x2e2   :  { %3442 = vmatpush3.bf16.msra.mxu0 %v3928_v0  ;;  %3421 = vmatprep.subr.bf16.mxu1 %v3929_v1 }
 0x2e3   :  { %3443 = vmatprep.subr.bf16.mxu0 %v3930_v2 }
 0x2e5   :  { %3422 = vmatpush3.bf16.msra.mxu1 %v3931_v3 }
 0x2e6   :  { %3444 = vmatpush3.bf16.msra.mxu0 %v3932_v4  ;;  %3423 = vmatprep.subr.bf16.mxu1 %v3933_v5 }
 0x2e7   :  { %3445 = vmatprep.subr.bf16.mxu0 %v3934_v32 }
 0x2e9   :  { %3424 = vmatpush3.bf16.msra.mxu1 %v3935_v6 }
 0x2ea   :  { %3446 = vmatpush3.bf16.msra.mxu0 %v3936_v7 }
 0x39f   :  { %v2509_v16 = vpop.f32.mrb[8].mxu1 }
 0x3a0   :  { %v3473_v17 = vadd.f32 %v2509_v16, %v1055_v9  ;;  %v2673_v18 = vpop.f32.mrb[12].mxu0  ;;  %v2511_v19 = vpop.f32.mrb[9].mxu1 }
 0x3a1   :  { %v3475_v20 = vadd.f32 %v2673_v18, %v1063_v10  ;;  %v3474_v21 = vadd.f32 %v2511_v19, %v1059_v13  ;;  %v2675_v27 = vpop.f32.mrb[13].mxu0  ;;  %v2513_v28 = vpop.f32.mrb[10].mxu1 }
 0x3a2   :  { %v2680_v30 = vmax.f32 %v3473_v17, 0.0  ;;  %v3476_v31 = vadd.f32 %v2675_v27, %v1067_v15  ;;  %v2677_v23 = vpop.f32.mrb[14].mxu0  ;;  %v2514_v11 = vpop.f32.mrb[11].mxu1 }
 0x3a3   :  { %v2682_v33 = vmax.f32 %v3475_v20, 0.0  ;;  %v2681_v47 = vmax.f32 %v3474_v21, 0.0  ;;  %v2678_v34 = vpop.f32.mrb[15].mxu0 }
 0x3a4   :  { %v2683_v29 = vmax.f32 %v3476_v31, 0.0  ;;  %v2684_v35 = vpack.c.bf16 %v2680_v30, %v2680_v30 }
 0x3a5   :  { %v2685_v25 = vpack.c.bf16 %v2681_v47, %v2681_v47  ;;  %v2686_v26 = vpack.c.bf16 %v2682_v33, %v2682_v33 }
 0x3a6   :  { %v2687_v22 = vpack.c.bf16 %v2683_v29, %v2683_v29 }
 0x3a7   :  { %2983 = vmatprep.mubr.bf16.mxu1 %v2685_v25 }
 0x3a8   :  { %3023 = vmatprep.mubr.bf16.mxu0 %v2687_v22  ;;  %2984 = vmatmul.mubr.bf16.vlgmr.msra.gmra.mrb[12].mxu1 %v2684_v35 }
 0x3a9   :  { %3024 = vmatmul.mubr.bf16.vlgmr.msra.gmra.mrb[16].mxu0 %v2686_v26 }
 0x47b   :  { %v3425_v14 = vpop.f32.mrb[12].mxu1 }
 0x47c   :  { %v3447_v36 = vpop.f32.mrb[16].mxu0  ;;  %v3426_v38 = vpop.f32.mrb[13].mxu1 }
 0x47d   :  { %v3427_v39 = vadd.f32 %v3426_v38, %v3425_v14  ;;  %v3448_v24 = vpop.f32.mrb[17].mxu0  ;;  %v3428_v40 = vpop.f32.mrb[14].mxu1 }
 0x47e   :  { %v3449_v41 = vadd.f32 %v3448_v24, %v3447_v36  ;;  %v3450_v42 = vpop.f32.mrb[18].mxu0  ;;  %v3429_v43 = vpop.f32.mrb[15].mxu1 }
 0x47f   :  { %v2986_v12 = vadd.f32 %v3427_v39, %v3367_v37  ;;  %v3451_v44 = vpop.f32.mrb[19].mxu0 }
 0x481   :  { %v3026_v45 = vadd.f32 %v3449_v41, %v2986_v12 }
 0x483   :  { %3031 = vst [vmem:[%s4222_s9] sm:$0xff] %v3026_v45 }
 0x484   :  { %3036 = vsyncpa [#allocation3], 1 }
 0x485   :  { %3037 = vsyncpa [#allocation5], 1 }

</bundles_post_ra>
